<compile_context>
chip_gen: v5e
topology: v5e:2x2
jax: 0.10.0
libtpu: 0.0.40
codegen_flags: <defaults>
</compile_context>

<pallas_src>
import functools

import jax
import jax.numpy as jnp
from jax.experimental import pallas as pl
from jax.experimental.pallas import tpu as pltpu


# Batch rows packed per kernel row.  8 * z_dim(=32) = 256 fills the MXU
# K-lanes on v6e/v7x (on v5e's 128-wide MXU this simply becomes 2 K-passes).
PACK = 8


def _round_up(x, m):
    return ((x + m - 1) // m) * m


def _block_diag(w, p):
    """Block-diagonal expansion: out[i*fi+a, j*fo+b] = (i==j) * w[a, b]."""
    fi, fo = w.shape
    eye = jnp.eye(p, dtype=w.dtype)
    return (eye[:, None, :, None] * w[None, :, None, :]).reshape(p * fi, p * fo)


def pack_decoder_params(params, pack=PACK):
    """Expand (w, b) pairs to block-diagonal / tiled packed form (done once)."""
    w1, b1, w2, b2, w3, b3, w4, b4 = params
    tile_b = lambda b: jnp.tile(b.reshape(1, -1), (1, pack))
    return (_block_diag(w1, pack), tile_b(b1),
            _block_diag(w2, pack), tile_b(b2),
            _block_diag(w3, pack), tile_b(b3),
            _block_diag(w4, pack), tile_b(b4))


def _decoder_kernel(z_ref,
                    w1_ref, b1_ref,
                    w2_ref, b2_ref,
                    w3_ref, b3_ref,
                    w4_ref, b4_ref,
                    out_ref):
    """One tile of packed rows: 4 MXU matmuls + bias adds + 3 ReLUs, fused."""
    h = z_ref[...]
    h = jnp.maximum(
        jnp.dot(h, w1_ref[...], preferred_element_type=jnp.float32) + b1_ref[...], 0.0)
    h = jnp.maximum(
        jnp.dot(h, w2_ref[...], preferred_element_type=jnp.float32) + b2_ref[...], 0.0)
    h = jnp.maximum(
        jnp.dot(h, w3_ref[...], preferred_element_type=jnp.float32) + b3_ref[...], 0.0)
    out = jnp.dot(h, w4_ref[...], preferred_element_type=jnp.float32) + b4_ref[...]
    out_ref[...] = out.astype(out_ref.dtype)


@functools.partial(jax.jit, static_argnames=("x_dim", "tile_rows"))
def decoder_forward(z, packed_params, x_dim, tile_rows=1024):
    """packed_params = pack_decoder_params(...); returns (batch, 3, x_dim)."""
    w1, b1, w2, b2, w3, b3, w4, b4 = packed_params
    batch, z_dim = z.shape
    zp = w1.shape[0]              # pack * z_dim
    pack = zp // z_dim
    outp = w4.shape[1]            # pack * 3 * x_dim (multiple of 128 here)
    out_dim = 3 * x_dim

    # Row-pack: `pack` batch rows -> one kernel row.  Pad at most pack-1 rows
    # of the small z stream; those rows' outputs are sliced off at the end.
    batch_pk = _round_up(batch, pack)
    if batch_pk != batch:
        z = jnp.pad(z, ((0, batch_pk - batch), (0, 0)))
    nrows = batch_pk // pack
    zr = z.reshape(nrows, zp)     # contiguous reshape: free

    # Tile size: big tiles amortize the ~0.35us/grid-step overhead, but keep
    # >=2 grid steps whenever possible so v7x can split them across both TCs.
    if nrows >= 16:
        tr = max(8, min(tile_rows, _round_up(pl.cdiv(nrows, 2), 8)))
    else:
        tr = nrows                # single block == full array dim (legal)
    grid = (pl.cdiv(nrows, tr),)  # last block may be partial: rows are
                                  # independent; OOB stores are dropped.

    z_spec = pl.BlockSpec((tr, zp), lambda i: (i, 0))
    out_spec = pl.BlockSpec((tr, outp), lambda i: (i, 0))
    # Weights / biases: full array, same block every step -> DMA'd once,
    # VMEM-resident across the whole grid (~2.3 MiB total at these shapes).
    resident = lambda a: pl.BlockSpec(a.shape, lambda i: (0, 0))

    w_bytes = 4 * (3 * zp * zp + zp * outp + 3 * zp + outp)
    tile_bytes = 4 * tr * (zp + outp)
    vmem_limit = max(min(2 * tile_bytes + w_bytes + (8 << 20), 48 << 20), 32 << 20)

    flops = 2 * nrows * (3 * zp * zp + zp * outp)       # executed (block-diag) flops
    bytes_accessed = 4 * nrows * (zp + outp) + w_bytes

    flat = pl.pallas_call(
        _decoder_kernel,
        out_shape=jax.ShapeDtypeStruct((nrows, outp), jnp.float32),
        grid_spec=pltpu.PrefetchScalarGridSpec(
            num_scalar_prefetch=0,
            grid=grid,
            in_specs=[z_spec,
                      resident(w1), resident(b1),
                      resident(w2), resident(b2),
                      resident(w3), resident(b3),
                      resident(w4), resident(b4)],
            out_specs=out_spec,
        ),
        compiler_params=pltpu.CompilerParams(
            dimension_semantics=("parallel",),   # v7x: shard tiles over 2 TCs
            vmem_limit_bytes=vmem_limit,
        ),
        cost_estimate=pl.CostEstimate(
            flops=flops, transcendentals=0, bytes_accessed=bytes_accessed),
    )(zr, w1, b1, w2, b2, w3, b3, w4, b4)

    out = flat.reshape(batch_pk, out_dim)   # contiguous un-pack: free
    if batch_pk != batch:
        out = out[:batch]                   # only in the ragged case
    return out.reshape(-1, 3, x_dim)        # torch's x.view((-1, 3, x_dim))


def init_decoder_params(key, x_dim, z_dim):
    """Deterministic synthetic parameters with the same shapes as the torch module."""
    ks = jax.random.split(key, 8)
    scale = 0.1

    def lin(kw, kb, fan_in, fan_out):
        w = scale * jax.random.normal(kw, (fan_in, fan_out), dtype=jnp.float32)
        b = scale * jax.random.normal(kb, (1, fan_out), dtype=jnp.float32)
        return w, b

    w1, b1 = lin(ks[0], ks[1], z_dim, z_dim)
    w2, b2 = lin(ks[2], ks[3], z_dim, z_dim)
    w3, b3 = lin(ks[4], ks[5], z_dim, z_dim)
    w4, b4 = lin(ks[6], ks[7], z_dim, x_dim * 3)
    return (w1, b1, w2, b2, w3, b3, w4, b4)


def decoder_reference(z, params, x_dim):
    """Pure-JAX reference (full-precision matmuls) for correctness checking."""
    w1, b1, w2, b2, w3, b3, w4, b4 = params
    hp = jax.lax.Precision.HIGHEST
    h = jnp.maximum(jnp.dot(z, w1, precision=hp) + b1, 0.0)
    h = jnp.maximum(jnp.dot(h, w2, precision=hp) + b2, 0.0)
    h = jnp.maximum(jnp.dot(h, w3, precision=hp) + b3, 0.0)
    out = jnp.dot(h, w4, precision=hp) + b4
    return out.reshape(-1, 3, x_dim)


if __name__ == "__main__":
    key = jax.random.PRNGKey(0)
    k_param, k_z1, k_z2 = jax.random.split(key, 3)

    x_dim = 64   # number of output points (out features = 3 * x_dim = 192)
    z_dim = 32   # latent dim
    params = init_decoder_params(k_param, x_dim, z_dim)
    packed = pack_decoder_params(params)

    # Case 1: small batch divisible by the pack factor (single grid step).
    batch = 64
    z = jax.random.normal(k_z1, (batch, z_dim), dtype=jnp.float32)
    out = jax.block_until_ready(decoder_forward(z, packed, x_dim))
    ref = decoder_reference(z, params, x_dim)
    assert out.shape == (batch, 3, x_dim), out.shape
    assert jnp.allclose(out, ref, atol=1e-4, rtol=1e-4), "mismatch vs reference (batch=64)"

    # Case 2: ragged batch (not a multiple of 8): exercises the small z pad,
    # a multi-step grid, and a partial last block (OOB stores dropped).
    batch2 = 300
    z2 = jax.random.normal(k_z2, (batch2, z_dim), dtype=jnp.float32)
    out2 = jax.block_until_ready(decoder_forward(z2, packed, x_dim))
    ref2 = decoder_reference(z2, params, x_dim)
    assert out2.shape == (batch2, 3, x_dim), out2.shape
    assert jnp.allclose(out2, ref2, atol=1e-4, rtol=1e-4), "mismatch vs reference (batch=300)"

    print("KERNEL_OK")
</pallas_src>

<mosaic_0001>
module attributes {stable_mosaic.version = 11 : i64} {
  func.func @_decoder_kernel(%arg0: i32, %arg1: memref<8x256xf32, #tpu.memory_space<vmem>>, %arg2: memref<256x256xf32, #tpu.memory_space<vmem>>, %arg3: memref<1x256xf32, #tpu.memory_space<vmem>>, %arg4: memref<256x256xf32, #tpu.memory_space<vmem>>, %arg5: memref<1x256xf32, #tpu.memory_space<vmem>>, %arg6: memref<256x256xf32, #tpu.memory_space<vmem>>, %arg7: memref<1x256xf32, #tpu.memory_space<vmem>>, %arg8: memref<256x1536xf32, #tpu.memory_space<vmem>>, %arg9: memref<1x1536xf32, #tpu.memory_space<vmem>>, %arg10: memref<8x1536xf32, #tpu.memory_space<vmem>>) attributes {dimension_semantics = [#tpu.dimension_semantics<parallel>], iteration_bounds = array<i64: 1>, scalar_prefetch = 0 : i64, scratch_operands = 0 : i64, tpu.core_type = #tpu.core_type<tc>, window_params = [{transform_indices = @transform_0, window_bounds = array<i64: 8, 256>}, {pipeline_mode = #tpu.pipeline_mode<synchronous>, transform_indices = @transform_1, window_bounds = array<i64: 256, 256>}, {pipeline_mode = #tpu.pipeline_mode<synchronous>, transform_indices = @transform_2, window_bounds = array<i64: 1, 256>}, {pipeline_mode = #tpu.pipeline_mode<synchronous>, transform_indices = @transform_3, window_bounds = array<i64: 256, 256>}, {pipeline_mode = #tpu.pipeline_mode<synchronous>, transform_indices = @transform_4, window_bounds = array<i64: 1, 256>}, {pipeline_mode = #tpu.pipeline_mode<synchronous>, transform_indices = @transform_5, window_bounds = array<i64: 256, 256>}, {pipeline_mode = #tpu.pipeline_mode<synchronous>, transform_indices = @transform_6, window_bounds = array<i64: 1, 256>}, {pipeline_mode = #tpu.pipeline_mode<synchronous>, transform_indices = @transform_7, window_bounds = array<i64: 256, 1536>}, {pipeline_mode = #tpu.pipeline_mode<synchronous>, transform_indices = @transform_8, window_bounds = array<i64: 1, 1536>}, {transform_indices = @transform_9, window_bounds = array<i64: 8, 1536>}]} {
    %c0 = arith.constant 0 : index
    %c0_0 = arith.constant 0 : index
    %0 = vector.load %arg1[%c0, %c0_0] : memref<8x256xf32, #tpu.memory_space<vmem>>, vector<8x256xf32>
    %c0_1 = arith.constant 0 : index
    %c0_2 = arith.constant 0 : index
    %1 = vector.load %arg2[%c0_1, %c0_2] : memref<256x256xf32, #tpu.memory_space<vmem>>, vector<256x256xf32>
    %cst = arith.constant dense<0.000000e+00> : vector<8x256xf32>
    %2 = tpu.matmul %0, %1, %cst {dimension_numbers = #tpu.dot_dimension_numbers<[1], [0], [0], [1], [0, 0, 1, 1], [], []>} : vector<8x256xf32>, vector<256x256xf32>, vector<8x256xf32> -> vector<8x256xf32>
    %c0_3 = arith.constant 0 : index
    %c0_4 = arith.constant 0 : index
    %3 = vector.load %arg3[%c0_3, %c0_4] : memref<1x256xf32, #tpu.memory_space<vmem>>, vector<1x256xf32>
    %4 = vector.broadcast %3 : vector<1x256xf32> to vector<8x256xf32>
    %5 = arith.addf %2, %4 : vector<8x256xf32>
    %cst_5 = arith.constant 0.000000e+00 : f32
    %6 = vector.broadcast %cst_5 : f32 to vector<8x256xf32>
    %7 = arith.maximumf %5, %6 : vector<8x256xf32>
    %c0_6 = arith.constant 0 : index
    %c0_7 = arith.constant 0 : index
    %8 = vector.load %arg4[%c0_6, %c0_7] : memref<256x256xf32, #tpu.memory_space<vmem>>, vector<256x256xf32>
    %cst_8 = arith.constant dense<0.000000e+00> : vector<8x256xf32>
    %9 = tpu.matmul %7, %8, %cst_8 {dimension_numbers = #tpu.dot_dimension_numbers<[1], [0], [0], [1], [0, 0, 1, 1], [], []>} : vector<8x256xf32>, vector<256x256xf32>, vector<8x256xf32> -> vector<8x256xf32>
    %c0_9 = arith.constant 0 : index
    %c0_10 = arith.constant 0 : index
    %10 = vector.load %arg5[%c0_9, %c0_10] : memref<1x256xf32, #tpu.memory_space<vmem>>, vector<1x256xf32>
    %11 = vector.broadcast %10 : vector<1x256xf32> to vector<8x256xf32>
    %12 = arith.addf %9, %11 : vector<8x256xf32>
    %cst_11 = arith.constant 0.000000e+00 : f32
    %13 = vector.broadcast %cst_11 : f32 to vector<8x256xf32>
    %14 = arith.maximumf %12, %13 : vector<8x256xf32>
    %c0_12 = arith.constant 0 : index
    %c0_13 = arith.constant 0 : index
    %15 = vector.load %arg6[%c0_12, %c0_13] : memref<256x256xf32, #tpu.memory_space<vmem>>, vector<256x256xf32>
    %cst_14 = arith.constant dense<0.000000e+00> : vector<8x256xf32>
    %16 = tpu.matmul %14, %15, %cst_14 {dimension_numbers = #tpu.dot_dimension_numbers<[1], [0], [0], [1], [0, 0, 1, 1], [], []>} : vector<8x256xf32>, vector<256x256xf32>, vector<8x256xf32> -> vector<8x256xf32>
    %c0_15 = arith.constant 0 : index
    %c0_16 = arith.constant 0 : index
    %17 = vector.load %arg7[%c0_15, %c0_16] : memref<1x256xf32, #tpu.memory_space<vmem>>, vector<1x256xf32>
    %18 = vector.broadcast %17 : vector<1x256xf32> to vector<8x256xf32>
    %19 = arith.addf %16, %18 : vector<8x256xf32>
    %cst_17 = arith.constant 0.000000e+00 : f32
    %20 = vector.broadcast %cst_17 : f32 to vector<8x256xf32>
    %21 = arith.maximumf %19, %20 : vector<8x256xf32>
    %c0_18 = arith.constant 0 : index
    %c0_19 = arith.constant 0 : index
    %22 = vector.load %arg8[%c0_18, %c0_19] : memref<256x1536xf32, #tpu.memory_space<vmem>>, vector<256x1536xf32>
    %cst_20 = arith.constant dense<0.000000e+00> : vector<8x1536xf32>
    %23 = tpu.matmul %21, %22, %cst_20 {dimension_numbers = #tpu.dot_dimension_numbers<[1], [0], [0], [1], [0, 0, 1, 1], [], []>} : vector<8x256xf32>, vector<256x1536xf32>, vector<8x1536xf32> -> vector<8x1536xf32>
    %c0_21 = arith.constant 0 : index
    %c0_22 = arith.constant 0 : index
    %24 = vector.load %arg9[%c0_21, %c0_22] : memref<1x1536xf32, #tpu.memory_space<vmem>>, vector<1x1536xf32>
    %25 = vector.broadcast %24 : vector<1x1536xf32> to vector<8x1536xf32>
    %26 = arith.addf %23, %25 : vector<8x1536xf32>
    %c0_23 = arith.constant 0 : index
    %c0_24 = arith.constant 0 : index
    %27 = vector.load %arg10[%c0_23, %c0_24] : memref<8x1536xf32, #tpu.memory_space<vmem>>, vector<8x1536xf32>
    tpu.vector_store %arg10[%c0_23, %c0_24], %26 {strides = array<i32>} : memref<8x1536xf32, #tpu.memory_space<vmem>>, vector<8x1536xf32>,
    return
  }
  func.func @transform_0(%arg0: i32) -> (i32, i32) {
    %c0_i32 = arith.constant 0 : i32
    %c0_i32_0 = arith.constant 0 : i32
    return %arg0, %c0_i32 : i32, i32
  }
  func.func @transform_1(%arg0: i32) -> (i32, i32) {
    %c0_i32 = arith.constant 0 : i32
    %c0_i32_0 = arith.constant 0 : i32
    %c0_i32_1 = arith.constant 0 : i32
    return %c0_i32, %c0_i32_0 : i32, i32
  }
  func.func @transform_2(%arg0: i32) -> (i32, i32) {
    %c0_i32 = arith.constant 0 : i32
    %c0_i32_0 = arith.constant 0 : i32
    %c0_i32_1 = arith.constant 0 : i32
    return %c0_i32, %c0_i32_0 : i32, i32
  }
  func.func @transform_3(%arg0: i32) -> (i32, i32) {
    %c0_i32 = arith.constant 0 : i32
    %c0_i32_0 = arith.constant 0 : i32
    %c0_i32_1 = arith.constant 0 : i32
    return %c0_i32, %c0_i32_0 : i32, i32
  }
  func.func @transform_4(%arg0: i32) -> (i32, i32) {
    %c0_i32 = arith.constant 0 : i32
    %c0_i32_0 = arith.constant 0 : i32
    %c0_i32_1 = arith.constant 0 : i32
    return %c0_i32, %c0_i32_0 : i32, i32
  }
  func.func @transform_5(%arg0: i32) -> (i32, i32) {
    %c0_i32 = arith.constant 0 : i32
    %c0_i32_0 = arith.constant 0 : i32
    %c0_i32_1 = arith.constant 0 : i32
    return %c0_i32, %c0_i32_0 : i32, i32
  }
  func.func @transform_6(%arg0: i32) -> (i32, i32) {
    %c0_i32 = arith.constant 0 : i32
    %c0_i32_0 = arith.constant 0 : i32
    %c0_i32_1 = arith.constant 0 : i32
    return %c0_i32, %c0_i32_0 : i32, i32
  }
  func.func @transform_7(%arg0: i32) -> (i32, i32) {
    %c0_i32 = arith.constant 0 : i32
    %c0_i32_0 = arith.constant 0 : i32
    %c0_i32_1 = arith.constant 0 : i32
    return %c0_i32, %c0_i32_0 : i32, i32
  }
  func.func @transform_8(%arg0: i32) -> (i32, i32) {
    %c0_i32 = arith.constant 0 : i32
    %c0_i32_0 = arith.constant 0 : i32
    %c0_i32_1 = arith.constant 0 : i32
    return %c0_i32, %c0_i32_0 : i32, i32
  }
  func.func @transform_9(%arg0: i32) -> (i32, i32) {
    %c0_i32 = arith.constant 0 : i32
    %c0_i32_0 = arith.constant 0 : i32
    return %arg0, %c0_i32 : i32, i32
  }
}

</mosaic_0001>

<bundles_post_ra>
// kernel: decoder_forward.1
= control target key start
LH: loop header
LB: loop body
LE: loop exit
PB: predicated region body
PF: predicated region fallthrough
CT: control target
= control target key end

     0   :  { %14 = vsyncpa [#allocation3], 0  ;;  %s1900_s0 = inlined_call_operand.vmem [shape: f32[8,256], index: 0, kind: input, shape index: {}]   ;;  %s1901_s1 = inlined_call_operand.hbm [shape: f32[256,256], index: 1, kind: input, shape index: {}]   ;;  %s1902_s2 = inlined_call_operand.hbm [shape: f32[1,256], index: 2, kind: input, shape index: {}]   ;;  %s1903_s3 = inlined_call_operand.hbm [shape: f32[256,256], index: 3, kind: input, shape index: {}]   ;;  %s1904_s4 = inlined_call_operand.hbm [shape: f32[1,256], index: 4, kind: input, shape index: {}]   ;;  %s1905_s5 = inlined_call_operand.hbm [shape: f32[256,256], index: 5, kind: input, shape index: {}]   ;;  %s1906_s6 = inlined_call_operand.hbm [shape: f32[1,256], index: 6, kind: input, shape index: {}]   ;;  %s1907_s7 = inlined_call_operand.hbm [shape: f32[256,1536], index: 7, kind: input, shape index: {}]   ;;  %s1908_s8 = inlined_call_operand.hbm [shape: f32[1,1536], index: 8, kind: input, shape index: {}]   ;;  %s1909_s9 = inlined_call_operand.vmem [shape: f32[8,1536], index: 9, kind: output, shape index: {}]  }
   0x1   :  { %15 = vsyncpa [#allocation5], 0 }
   0x2   :  { %16 = vsyncpa [#allocation8], 0 }
   0x3   :  { %17 = vsyncpa [#allocation11], 0  ;;  %s39_s11 = sshll.u32 %s1902_s2, 4  ;;  %s40_s11 = int_to_ptr.hbm [resolvable:$true] %s39_s11 }
   0x4   :  { %18 = vsyncpa [#allocation14], 0  ;;  %s1734_s12 = smov [#allocation4]   ;;  %s63_s16 = sshll.u32 %s1904_s4, 4  ;;  %s64_s16 = int_to_ptr.hbm [resolvable:$true] %s63_s16 }
   0x5   :  { %s41_s13 = sshll.u32 %s1734_s12, 4  ;;  %s1735_s17 = smov [#allocation7]   ;;  %s42_s13 = int_to_ptr.vmem [resolvable:$true] %s41_s13 }
   0x6   :  { %44 = dma.hbm_to_vmem [thread:$0]  %s40_s11, 32, %s42_s13, [#allocation5]  }
   0x7   :  { %s65_s18 = sshll.u32 %s1735_s17, 4  ;;  %s87_s21 = sshll.u32 %s1906_s6, 4  ;;  %s66_s18 = int_to_ptr.vmem [resolvable:$true] %s65_s18  ;;  %s88_s21 = int_to_ptr.hbm [resolvable:$true] %s87_s21 }
   0x8   :  { %68 = dma.hbm_to_vmem [thread:$0]  %s64_s16, 32, %s66_s18, [#allocation8]  }
   0x9   :  { %s25_s23 = sshll.u32 %s1901_s1, 4  ;;  %s1736_s24 = smov [#allocation10]   ;;  %s26_s23 = int_to_ptr.hbm [resolvable:$true] %s25_s23 }
   0xa   :  { %s89_s25 = sshll.u32 %s1736_s24, 4  ;;  %s1737_s4 = smov [#allocation2]   ;;  %s90_s25 = int_to_ptr.vmem [resolvable:$true] %s89_s25 }
   0xb   :  { %92 = dma.hbm_to_vmem [thread:$0]  %s88_s21, 32, %s90_s25, [#allocation11]  }
   0xc   :  { %s27_s26 = sshll.u32 %s1737_s4, 4  ;;  %s1738_s27 = smov 256   ;;  %s28_s26 = int_to_ptr.vmem [resolvable:$true] %s27_s26 }
   0xd   :  { %s1739_s28 = smov 16   ;;  %s49_s30 = sshll.u32 %s1903_s3, 4  ;;  %s50_s30 = int_to_ptr.hbm [resolvable:$true] %s49_s30 }
   0xe   :  { %33 = dma.hbm_to_vmem [thread:$0]  %s26_s23, 8192, %s28_s26, [#allocation3], %s1738_s27, %s1738_s27, %s1739_s28  }
   0xf   :  { %s1740_s10 = smov [#allocation6]   ;;  %s73_s13 = sshll.u32 %s1905_s5, 4  ;;  %s74_s13 = int_to_ptr.hbm [resolvable:$true] %s73_s13 }
  0x10   :  { %s51_s11 = sshll.u32 %s1740_s10, 4  ;;  %s1741_s14 = smov [#allocation9]   ;;  %s52_s11 = int_to_ptr.vmem [resolvable:$true] %s51_s11 }
  0x11   :  { %57 = dma.hbm_to_vmem [thread:$0]  %s50_s30, 8192, %s52_s11, [#allocation5], %s1738_s27, %s1738_s27, %s1739_s28  }
  0x12   :  { %s75_s15 = sshll.u32 %s1741_s14, 4  ;;  %s97_s18 = sshll.u32 %s1907_s7, 4  ;;  %s76_s15 = int_to_ptr.vmem [resolvable:$true] %s75_s15  ;;  %s98_s18 = int_to_ptr.hbm [resolvable:$true] %s97_s18 }
  0x13   :  { %81 = dma.hbm_to_vmem [thread:$0]  %s74_s13, 8192, %s76_s15, [#allocation8], %s1738_s27, %s1738_s27, %s1739_s28  }
  0x14   :  { %s1742_s3 = smov [#allocation12]   ;;  %s111_s2 = sshll.u32 %s1908_s8, 4  ;;  %s112_s2 = int_to_ptr.hbm [resolvable:$true] %s111_s2 }
  0x15   :  { %s99_s19 = sshll.u32 %s1742_s3, 4  ;;  %s1743_s22 = smov 1536   ;;  %s100_s19 = int_to_ptr.vmem [resolvable:$true] %s99_s19 }
  0x16   :  { %s1744_s5 = smov 96   ;;  %s1745_s23 = smov [#allocation13]  }
  0x17   :  { %105 = dma.hbm_to_vmem [thread:$0]  %s98_s18, 49152, %s100_s19, [#allocation11], %s1743_s22, %s1743_s22, %s1744_s5  }
  0x18   :  { %s113_s24 = sshll.u32 %s1745_s23, 4  ;;  %s114_s24 = int_to_ptr.vmem [resolvable:$true] %s113_s24 }
  0x19   :  { %116 = dma.hbm_to_vmem [thread:$0]  %s112_s2, 192, %s114_s24, [#allocation14]  }
  0x1a   :  { %1724 = dma.done.wait [#allocation3], 8192  }
  0x1b   :  { %1725 = vsyncadd [#allocation3], 4294959104 }
  0x1c   :  { %1726 = dma.done.wait [#allocation5], 8224  }
  0x1d   :  { %1727 = vsyncadd [#allocation5], 4294959072 }
  0x1e   :  { %1728 = dma.done.wait [#allocation8], 8224  }
  0x1f   :  { %1729 = vsyncadd [#allocation8], 4294959072 }
  0x20   :  { %1730 = dma.done.wait [#allocation11], 49184  }
  0x21   :  { %1731 = vsyncadd [#allocation11], 4294918112 }
  0x22   :  { %1732 = dma.done.wait [#allocation14], 192  }
  0x23   :  { %1733 = vsyncadd [#allocation14], 4294967104  ;;  %v182_v0 = vld [vmem:[#allocation2 + $0xf8] sm:$0xff]  ;;  %v180_v1 = vld [vmem:[#allocation2 + $0xe8] sm:$0xff] }
  0x24   :  { %v214_v2 = vld [vmem:[#allocation2 + $0x1f8] sm:$0xff]  ;;  %261 = vmatpush.msra.mxu2 %v182_v0  ;;  %v181_v3 = vld [vmem:[#allocation2 + $0xf0] sm:$0xff]  ;;  %v212_v4 = vld [vmem:[#allocation2 + $0x1e8] sm:$0xff] }
  0x25   :  { %281 = vmatpush.msra.mxu3 %v214_v2  ;;  %221 = vmatpush.msra.mxu0 %v181_v3  ;;  %v178_v5 = vld [vmem:[#allocation2 + $0xd8] sm:$0xff]  ;;  %v179_v6 = vld [vmem:[#allocation2 + $0xe0] sm:$0xff]  ;;  %v213_v7 = vld [vmem:[#allocation2 + $0x1f0] sm:$0xff] }
  0x26   :  { %262 = vmatpush.msra.mxu2 %v180_v1  ;;  %v210_v8 = vld [vmem:[#allocation2 + $0x1d8] sm:$0xff]  ;;  %v177_v9 = vld [vmem:[#allocation2 + $0xd0] sm:$0xff]  ;;  %v211_v10 = vld [vmem:[#allocation2 + $0x1e0] sm:$0xff]  ;;  %241 = vmatpush.msra.mxu1 %v213_v7 }
  0x27   :  { %282 = vmatpush.msra.mxu3 %v212_v4  ;;  %222 = vmatpush.msra.mxu0 %v179_v6  ;;  %v176_v11 = vld [vmem:[#allocation2 + $0xc8] sm:$0xff]  ;;  %v175_v13 = vld [vmem:[#allocation2 + $0xc0] sm:$0xff]  ;;  %v209_v14 = vld [vmem:[#allocation2 + $0x1d0] sm:$0xff] }
  0x28   :  { %v208_v12 = vld [vmem:[#allocation2 + $0x1c8] sm:$0xff]  ;;  %263 = vmatpush.msra.mxu2 %v178_v5  ;;  %242 = vmatpush.msra.mxu1 %v211_v10  ;;  %v174_v15 = vld [vmem:[#allocation2 + $0xb8] sm:$0xff]  ;;  %v173_v17 = vld [vmem:[#allocation2 + $0xb0] sm:$0xff] }
  0x29   :  { %283 = vmatpush.msra.mxu3 %v210_v8  ;;  %223 = vmatpush.msra.mxu0 %v177_v9  ;;  %v206_v16 = vld [vmem:[#allocation2 + $0x1b8] sm:$0xff]  ;;  %v207_v18 = vld [vmem:[#allocation2 + $0x1c0] sm:$0xff]  ;;  %v172_v19 = vld [vmem:[#allocation2 + $0xa8] sm:$0xff] }
  0x2a   :  { %264 = vmatpush.msra.mxu2 %v176_v11  ;;  %243 = vmatpush.msra.mxu1 %v209_v14  ;;  %v204_v20 = vld [vmem:[#allocation2 + $0x1a8] sm:$0xff]  ;;  %v171_v21 = vld [vmem:[#allocation2 + $0xa0] sm:$0xff]  ;;  %v205_v22 = vld [vmem:[#allocation2 + $0x1b0] sm:$0xff] }
  0x2b   :  { %284 = vmatpush.msra.mxu3 %v208_v12  ;;  %224 = vmatpush.msra.mxu0 %v175_v13  ;;  %v170_v23 = vld [vmem:[#allocation2 + $0x98] sm:$0xff]  ;;  %v169_v25 = vld [vmem:[#allocation2 + $0x90] sm:$0xff]  ;;  %v203_v26 = vld [vmem:[#allocation2 + $0x1a0] sm:$0xff] }
  0x2c   :  { %265 = vmatpush.msra.mxu2 %v174_v15  ;;  %244 = vmatpush.msra.mxu1 %v207_v18  ;;  %v202_v24 = vld [vmem:[#allocation2 + $0x198] sm:$0xff]  ;;  %v168_v27 = vld [vmem:[#allocation2 + $0x88] sm:$0xff]  ;;  %v167_v29 = vld [vmem:[#allocation2 + $0x80] sm:$0xff] }
  0x2d   :  { %285 = vmatpush.msra.mxu3 %v206_v16  ;;  %225 = vmatpush.msra.mxu0 %v173_v17  ;;  %v200_v28 = vld [vmem:[#allocation2 + $0x188] sm:$0xff]  ;;  %v201_v30 = vld [vmem:[#allocation2 + $0x190] sm:$0xff]  ;;  %v166_v31 = vld [vmem:[#allocation2 + $0x78] sm:$0xff] }
  0x2e   :  { %266 = vmatpush.msra.mxu2 %v172_v19  ;;  %245 = vmatpush.msra.mxu1 %v205_v22  ;;  %v198_v32 = vld [vmem:[#allocation2 + $0x178] sm:$0xff]  ;;  %v165_v33 = vld [vmem:[#allocation2 + $0x70] sm:$0xff]  ;;  %v199_v34 = vld [vmem:[#allocation2 + $0x180] sm:$0xff] }
  0x2f   :  { %286 = vmatpush.msra.mxu3 %v204_v20  ;;  %226 = vmatpush.msra.mxu0 %v171_v21  ;;  %v164_v35 = vld [vmem:[#allocation2 + $0x68] sm:$0xff]  ;;  %v163_v37 = vld [vmem:[#allocation2 + $0x60] sm:$0xff]  ;;  %v197_v38 = vld [vmem:[#allocation2 + $0x170] sm:$0xff] }
  0x30   :  { %267 = vmatpush.msra.mxu2 %v170_v23  ;;  %246 = vmatpush.msra.mxu1 %v203_v26  ;;  %v196_v36 = vld [vmem:[#allocation2 + $0x168] sm:$0xff]  ;;  %v162_v39 = vld [vmem:[#allocation2 + $0x58] sm:$0xff]  ;;  %v161_v41 = vld [vmem:[#allocation2 + $0x50] sm:$0xff] }
  0x31   :  { %287 = vmatpush.msra.mxu3 %v202_v24  ;;  %227 = vmatpush.msra.mxu0 %v169_v25  ;;  %v194_v40 = vld [vmem:[#allocation2 + $0x158] sm:$0xff]  ;;  %v195_v42 = vld [vmem:[#allocation2 + $0x160] sm:$0xff]  ;;  %v160_v43 = vld [vmem:[#allocation2 + $0x48] sm:$0xff] }
  0x32   :  { %268 = vmatpush.msra.mxu2 %v168_v27  ;;  %247 = vmatpush.msra.mxu1 %v201_v30  ;;  %v192_v44 = vld [vmem:[#allocation2 + $0x148] sm:$0xff]  ;;  %v159_v45 = vld [vmem:[#allocation2 + $0x40] sm:$0xff]  ;;  %v193_v46 = vld [vmem:[#allocation2 + $0x150] sm:$0xff] }
  0x33   :  { %288 = vmatpush.msra.mxu3 %v200_v28  ;;  %228 = vmatpush.msra.mxu0 %v167_v29  ;;  %v158_v47 = vld [vmem:[#allocation2 + $0x38] sm:$0xff]  ;;  %v157_v49 = vld [vmem:[#allocation2 + $0x30] sm:$0xff]  ;;  %v191_v50 = vld [vmem:[#allocation2 + $0x140] sm:$0xff] }
  0x34   :  { %269 = vmatpush.msra.mxu2 %v166_v31  ;;  %248 = vmatpush.msra.mxu1 %v199_v34  ;;  %v190_v48 = vld [vmem:[#allocation2 + $0x138] sm:$0xff]  ;;  %v156_v51 = vld [vmem:[#allocation2 + $0x28] sm:$0xff]  ;;  %v155_v53 = vld [vmem:[#allocation2 + $0x20] sm:$0xff] }
  0x35   :  { %289 = vmatpush.msra.mxu3 %v198_v32  ;;  %229 = vmatpush.msra.mxu0 %v165_v33  ;;  %v188_v52 = vld [vmem:[#allocation2 + $0x128] sm:$0xff]  ;;  %v189_v54 = vld [vmem:[#allocation2 + $0x130] sm:$0xff]  ;;  %v154_v55 = vld [vmem:[#allocation2 + $0x18] sm:$0xff] }
  0x36   :  { %270 = vmatpush.msra.mxu2 %v164_v35  ;;  %249 = vmatpush.msra.mxu1 %v197_v38  ;;  %v186_v56 = vld [vmem:[#allocation2 + $0x118] sm:$0xff]  ;;  %v153_v57 = vld [vmem:[#allocation2 + $0x10] sm:$0xff]  ;;  %v187_v58 = vld [vmem:[#allocation2 + $0x120] sm:$0xff] }
  0x37   :  { %290 = vmatpush.msra.mxu3 %v196_v36  ;;  %230 = vmatpush.msra.mxu0 %v163_v37  ;;  %v152_v59 = vld [vmem:[#allocation2 + $0x8] sm:$0xff]  ;;  %v149_v61 = vld [vmem:[%s1900_s0] sm:$0xff]  ;;  %v185_v0 = vld [vmem:[#allocation2 + $0x110] sm:$0xff] }
  0x38   :  { %271 = vmatpush.msra.mxu2 %v162_v39  ;;  %250 = vmatpush.msra.mxu1 %v195_v42  ;;  %v184_v60 = vld [vmem:[#allocation2 + $0x108] sm:$0xff]  ;;  %v151_v63 = vld [vmem:[#allocation2] sm:$0xff]  ;;  %v333_v3 = vld [vmem:[#allocation6 + $0xf0] sm:$0xff] }
  0x39   :  { %291 = vmatpush.msra.mxu3 %v194_v40  ;;  %231 = vmatpush.msra.mxu0 %v161_v41  ;;  %v150_v62 = vld [vmem:[%s1900_s0 + $0x8] sm:$0xff]  ;;  %v334_v1 = vld [vmem:[#allocation6 + $0xf8] sm:$0xff]  ;;  %v365_v6 = vld [vmem:[#allocation6 + $0x1f0] sm:$0xff] }
  0x3a   :  { %272 = vmatpush.msra.mxu2 %v160_v43  ;;  %251 = vmatpush.msra.mxu1 %v193_v46  ;;  %v183_v2 = vld [vmem:[#allocation2 + $0x100] sm:$0xff]  ;;  %v332_v4 = vld [vmem:[#allocation6 + $0xe8] sm:$0xff]  ;;  %v329_v9 = vld [vmem:[#allocation6 + $0xd0] sm:$0xff] }
  0x3b   :  { %292 = vmatpush.msra.mxu3 %v192_v44  ;;  %232 = vmatpush.msra.mxu0 %v159_v45  ;;  %v331_v5 = vld [vmem:[#allocation6 + $0xe0] sm:$0xff]  ;;  %v366_v7 = vld [vmem:[#allocation6 + $0x1f8] sm:$0xff]  ;;  %v364_v11 = vld [vmem:[#allocation6 + $0x1e8] sm:$0xff] }
  0x3c   :  { %273 = vmatpush.msra.mxu2 %v158_v47  ;;  %252 = vmatpush.msra.mxu1 %v191_v50  ;;  %v330_v8 = vld [vmem:[#allocation6 + $0xd8] sm:$0xff]  ;;  %v363_v10 = vld [vmem:[#allocation6 + $0x1e0] sm:$0xff]  ;;  %v328_v12 = vld [vmem:[#allocation6 + $0xc8] sm:$0xff] }
  0x3d   :  { %293 = vmatpush.msra.mxu3 %v190_v48  ;;  %233 = vmatpush.msra.mxu0 %v157_v49  ;;  %v327_v13 = vld [vmem:[#allocation6 + $0xc0] sm:$0xff]  ;;  %v361_v14 = vld [vmem:[#allocation6 + $0x1d0] sm:$0xff]  ;;  %v362_v15 = vld [vmem:[#allocation6 + $0x1d8] sm:$0xff] }
  0x3e   :  { %274 = vmatpush.msra.mxu2 %v156_v51  ;;  %253 = vmatpush.msra.mxu1 %v189_v54  ;;  %v326_v16 = vld [vmem:[#allocation6 + $0xb8] sm:$0xff]  ;;  %v325_v17 = vld [vmem:[#allocation6 + $0xb0] sm:$0xff]  ;;  %v359_v18 = vld [vmem:[#allocation6 + $0x1c0] sm:$0xff] }
  0x3f   :  { %294 = vmatpush.msra.mxu3 %v188_v52  ;;  %234 = vmatpush.msra.mxu0 %v155_v53  ;;  %v360_v19 = vld [vmem:[#allocation6 + $0x1c8] sm:$0xff]  ;;  %v323_v21 = vld [vmem:[#allocation6 + $0xa0] sm:$0xff]  ;;  %v357_v22 = vld [vmem:[#allocation6 + $0x1b0] sm:$0xff] }
  0x40   :  { %275 = vmatpush.msra.mxu2 %v154_v55  ;;  %254 = vmatpush.msra.mxu1 %v187_v58  ;;  %v324_v20 = vld [vmem:[#allocation6 + $0xa8] sm:$0xff]  ;;  %v358_v23 = vld [vmem:[#allocation6 + $0x1b8] sm:$0xff]  ;;  %v321_v25 = vld [vmem:[#allocation6 + $0x90] sm:$0xff] }
  0x41   :  { %295 = vmatpush.msra.mxu3 %v186_v56  ;;  %235 = vmatpush.msra.mxu0 %v153_v57  ;;  %v322_v24 = vld [vmem:[#allocation6 + $0x98] sm:$0xff]  ;;  %v355_v26 = vld [vmem:[#allocation6 + $0x1a0] sm:$0xff]  ;;  %v356_v27 = vld [vmem:[#allocation6 + $0x1a8] sm:$0xff] }
  0x42   :  { %276 = vmatpush.msra.mxu2 %v152_v59  ;;  %255 = vmatpush.msra.mxu1 %v185_v0  ;;  %v320_v28 = vld [vmem:[#allocation6 + $0x88] sm:$0xff]  ;;  %v319_v29 = vld [vmem:[#allocation6 + $0x80] sm:$0xff]  ;;  %v353_v30 = vld [vmem:[#allocation6 + $0x190] sm:$0xff] }
  0x43   :  { %296 = vmatpush.msra.mxu3 %v184_v60  ;;  %277 = vmatmul.f32.vlgmr.msra.gmra.mxu2 %v149_v61  ;;  %v354_v31 = vld [vmem:[#allocation6 + $0x198] sm:$0xff]  ;;  %v317_v33 = vld [vmem:[#allocation6 + $0x70] sm:$0xff]  ;;  %v351_v34 = vld [vmem:[#allocation6 + $0x180] sm:$0xff] }
  0x44   :  { %297 = vmatmul.f32.vlgmr.msra.gmra.mxu3 %v150_v62  ;;  %236 = vmatpush.msra.mxu0 %v151_v63  ;;  %v318_v32 = vld [vmem:[#allocation6 + $0x78] sm:$0xff]  ;;  %v352_v35 = vld [vmem:[#allocation6 + $0x188] sm:$0xff]  ;;  %v315_v37 = vld [vmem:[#allocation6 + $0x60] sm:$0xff] }
  0x45   :  { %237 = vmatmul.f32.vlgmr.msra.gmra.mxu0 %v149_v61  ;;  %413 = vmatpush.msrb.mxu2 %v334_v1  ;;  %v316_v36 = vld [vmem:[#allocation6 + $0x68] sm:$0xff]  ;;  %v349_v38 = vld [vmem:[#allocation6 + $0x170] sm:$0xff]  ;;  %v350_v39 = vld [vmem:[#allocation6 + $0x178] sm:$0xff] }
  0x46   :  { %256 = vmatpush.msra.mxu1 %v183_v2  ;;  %373 = vmatpush.msrb.mxu0 %v333_v3  ;;  %v314_v40 = vld [vmem:[#allocation6 + $0x58] sm:$0xff]  ;;  %v313_v41 = vld [vmem:[#allocation6 + $0x50] sm:$0xff]  ;;  %v347_v42 = vld [vmem:[#allocation6 + $0x160] sm:$0xff] }
  0x47   :  { %257 = vmatmul.f32.vlgmr.msra.gmra.mxu1 %v150_v62  ;;  %414 = vmatpush.msrb.mxu2 %v332_v4  ;;  %v348_v43 = vld [vmem:[#allocation6 + $0x168] sm:$0xff]  ;;  %v311_v45 = vld [vmem:[#allocation6 + $0x40] sm:$0xff]  ;;  %v345_v46 = vld [vmem:[#allocation6 + $0x150] sm:$0xff] }
  0x48   :  { %374 = vmatpush.msrb.mxu0 %v331_v5  ;;  %393 = vmatpush.msrb.mxu1 %v365_v6  ;;  %v312_v44 = vld [vmem:[#allocation6 + $0x48] sm:$0xff]  ;;  %v346_v47 = vld [vmem:[#allocation6 + $0x158] sm:$0xff]  ;;  %v309_v48 = vld [vmem:[#allocation6 + $0x30] sm:$0xff] }
  0x49   :  { %433 = vmatpush.msrb.mxu3 %v366_v7  ;;  %415 = vmatpush.msrb.mxu2 %v330_v8  ;;  %v343_v49 = vld [vmem:[#allocation6 + $0x140] sm:$0xff]  ;;  %v310_v50 = vld [vmem:[#allocation6 + $0x38] sm:$0xff]  ;;  %v344_v51 = vld [vmem:[#allocation6 + $0x148] sm:$0xff] }
  0x4a   :  { %375 = vmatpush.msrb.mxu0 %v329_v9  ;;  %394 = vmatpush.msrb.mxu1 %v363_v10  ;;  %v307_v52 = vld [vmem:[#allocation6 + $0x20] sm:$0xff]  ;;  %v341_v53 = vld [vmem:[#allocation6 + $0x130] sm:$0xff]  ;;  %v308_v54 = vld [vmem:[#allocation6 + $0x28] sm:$0xff] }
  0x4b   :  { %434 = vmatpush.msrb.mxu3 %v364_v11  ;;  %416 = vmatpush.msrb.mxu2 %v328_v12  ;;  %v342_v55 = vld [vmem:[#allocation6 + $0x138] sm:$0xff]  ;;  %v305_v56 = vld [vmem:[#allocation6 + $0x10] sm:$0xff]  ;;  %v339_v57 = vld [vmem:[#allocation6 + $0x120] sm:$0xff] }
  0x4c   :  { %376 = vmatpush.msrb.mxu0 %v327_v13  ;;  %395 = vmatpush.msrb.mxu1 %v361_v14  ;;  %v306_v58 = vld [vmem:[#allocation6 + $0x18] sm:$0xff]  ;;  %v340_v59 = vld [vmem:[#allocation6 + $0x128] sm:$0xff]  ;;  %v303_v60 = vld [vmem:[#allocation6] sm:$0xff] }
  0x4d   :  { %435 = vmatpush.msrb.mxu3 %v362_v15  ;;  %417 = vmatpush.msrb.mxu2 %v326_v16  ;;  %v337_v61 = vld [vmem:[#allocation6 + $0x110] sm:$0xff]  ;;  %v304_v62 = vld [vmem:[#allocation6 + $0x8] sm:$0xff]  ;;  %v338_v63 = vld [vmem:[#allocation6 + $0x118] sm:$0xff] }
  0x4e   :  { %377 = vmatpush.msrb.mxu0 %v325_v17  ;;  %396 = vmatpush.msrb.mxu1 %v359_v18  ;;  %v335_v0 = vld [vmem:[#allocation6 + $0x100] sm:$0xff]  ;;  %v336_v1 = vld [vmem:[#allocation6 + $0x108] sm:$0xff]  ;;  %v485_v2 = vld [vmem:[#allocation9 + $0xf0] sm:$0xff] }
  0x4f   :  { %436 = vmatpush.msrb.mxu3 %v360_v19  ;;  %418 = vmatpush.msrb.mxu2 %v324_v20  ;;  %v486_v3 = vld [vmem:[#allocation9 + $0xf8] sm:$0xff]  ;;  %v483_v4 = vld [vmem:[#allocation9 + $0xe0] sm:$0xff]  ;;  %v484_v5 = vld [vmem:[#allocation9 + $0xe8] sm:$0xff] }
  0x50   :  { %378 = vmatpush.msrb.mxu0 %v323_v21  ;;  %397 = vmatpush.msrb.mxu1 %v357_v22  ;;  %v481_v6 = vld [vmem:[#allocation9 + $0xd0] sm:$0xff]  ;;  %v482_v7 = vld [vmem:[#allocation9 + $0xd8] sm:$0xff]  ;;  %v515_v10 = vld [vmem:[#allocation9 + $0x1e0] sm:$0xff] }
  0x51   :  { %437 = vmatpush.msrb.mxu3 %v358_v23  ;;  %419 = vmatpush.msrb.mxu2 %v322_v24  ;;  %v517_v8 = vld [vmem:[#allocation9 + $0x1f0] sm:$0xff]  ;;  %v518_v9 = vld [vmem:[#allocation9 + $0x1f8] sm:$0xff]  ;;  %v479_v11 = vld [vmem:[#allocation9 + $0xc0] sm:$0xff] }
  0x52   :  { %379 = vmatpush.msrb.mxu0 %v321_v25  ;;  %398 = vmatpush.msrb.mxu1 %v355_v26  ;;  %v480_v12 = vld [vmem:[#allocation9 + $0xc8] sm:$0xff]  ;;  %v513_v14 = vld [vmem:[#allocation9 + $0x1d0] sm:$0xff]  ;;  %v514_v15 = vld [vmem:[#allocation9 + $0x1d8] sm:$0xff] }
  0x53   :  { %438 = vmatpush.msrb.mxu3 %v356_v27  ;;  %420 = vmatpush.msrb.mxu2 %v320_v28  ;;  %v516_v13 = vld [vmem:[#allocation9 + $0x1e8] sm:$0xff]  ;;  %v477_v16 = vld [vmem:[#allocation9 + $0xb0] sm:$0xff]  ;;  %v478_v17 = vld [vmem:[#allocation9 + $0xb8] sm:$0xff] }
  0x54   :  { %380 = vmatpush.msrb.mxu0 %v319_v29  ;;  %399 = vmatpush.msrb.mxu1 %v353_v30  ;;  %v511_v18 = vld [vmem:[#allocation9 + $0x1c0] sm:$0xff]  ;;  %v512_v19 = vld [vmem:[#allocation9 + $0x1c8] sm:$0xff]  ;;  %v509_v22 = vld [vmem:[#allocation9 + $0x1b0] sm:$0xff] }
  0x55   :  { %439 = vmatpush.msrb.mxu3 %v354_v31  ;;  %421 = vmatpush.msrb.mxu2 %v318_v32  ;;  %v475_v20 = vld [vmem:[#allocation9 + $0xa0] sm:$0xff]  ;;  %v476_v21 = vld [vmem:[#allocation9 + $0xa8] sm:$0xff]  ;;  %v510_v23 = vld [vmem:[#allocation9 + $0x1b8] sm:$0xff] }
  0x56   :  { %381 = vmatpush.msrb.mxu0 %v317_v33  ;;  %400 = vmatpush.msrb.mxu1 %v351_v34  ;;  %v473_v24 = vld [vmem:[#allocation9 + $0x90] sm:$0xff]  ;;  %v474_v25 = vld [vmem:[#allocation9 + $0x98] sm:$0xff]  ;;  %v507_v26 = vld [vmem:[#allocation9 + $0x1a0] sm:$0xff] }
  0x57   :  { %440 = vmatpush.msrb.mxu3 %v352_v35  ;;  %422 = vmatpush.msrb.mxu2 %v316_v36  ;;  %v508_v27 = vld [vmem:[#allocation9 + $0x1a8] sm:$0xff]  ;;  %v471_v28 = vld [vmem:[#allocation9 + $0x80] sm:$0xff]  ;;  %v505_v30 = vld [vmem:[#allocation9 + $0x190] sm:$0xff] }
  0x58   :  { %382 = vmatpush.msrb.mxu0 %v315_v37  ;;  %401 = vmatpush.msrb.mxu1 %v349_v38  ;;  %v472_v29 = vld [vmem:[#allocation9 + $0x88] sm:$0xff]  ;;  %v506_v31 = vld [vmem:[#allocation9 + $0x198] sm:$0xff]  ;;  %v469_v32 = vld [vmem:[#allocation9 + $0x70] sm:$0xff] }
  0x59   :  { %441 = vmatpush.msrb.mxu3 %v350_v39  ;;  %423 = vmatpush.msrb.mxu2 %v314_v40  ;;  %v470_v33 = vld [vmem:[#allocation9 + $0x78] sm:$0xff]  ;;  %v503_v35 = vld [vmem:[#allocation9 + $0x180] sm:$0xff]  ;;  %v504_v36 = vld [vmem:[#allocation9 + $0x188] sm:$0xff] }
  0x5a   :  { %383 = vmatpush.msrb.mxu0 %v313_v41  ;;  %402 = vmatpush.msrb.mxu1 %v347_v42  ;;  %v215_v34 = vld [vmem:[#allocation4] sm:$0x3]  ;;  %v467_v37 = vld [vmem:[#allocation9 + $0x60] sm:$0xff]  ;;  %v468_v38 = vld [vmem:[#allocation9 + $0x68] sm:$0xff] }
  0x5b   :  { %442 = vmatpush.msrb.mxu3 %v348_v43  ;;  %424 = vmatpush.msrb.mxu2 %v312_v44  ;;  %v501_v39 = vld [vmem:[#allocation9 + $0x170] sm:$0xff]  ;;  %v502_v40 = vld [vmem:[#allocation9 + $0x178] sm:$0xff]  ;;  %v217_v41 = vperm.slane %v215_v34, 0  ;;  %v463_v44 = vld [vmem:[#allocation9 + $0x40] sm:$0xff] }
  0x5c   :  { %384 = vmatpush.msrb.mxu0 %v311_v45  ;;  %403 = vmatpush.msrb.mxu1 %v345_v46  ;;  %v465_v42 = vld [vmem:[#allocation9 + $0x50] sm:$0xff]  ;;  %v466_v43 = vld [vmem:[#allocation9 + $0x58] sm:$0xff]  ;;  %v464_v45 = vld [vmem:[#allocation9 + $0x48] sm:$0xff] }
  0x5d   :  { %443 = vmatpush.msrb.mxu3 %v346_v47  ;;  %425 = vmatpush.msrb.mxu2 %v310_v50 }
  0x5e   :  { %385 = vmatpush.msrb.mxu0 %v309_v48  ;;  %404 = vmatpush.msrb.mxu1 %v343_v49  ;;  %v218_v48 = vperm.slane %v215_v34, 1  ;;  %v728_v34 = vld [vmem:[#allocation12 + $0x3c8] sm:$0xff] }
  0x5f   :  { %444 = vmatpush.msrb.mxu3 %v344_v51  ;;  %426 = vmatpush.msrb.mxu2 %v308_v54 }
  0x60   :  { %386 = vmatpush.msrb.mxu0 %v307_v52  ;;  %405 = vmatpush.msrb.mxu1 %v341_v53 }
  0x61   :  { %445 = vmatpush.msrb.mxu3 %v342_v55  ;;  %427 = vmatpush.msrb.mxu2 %v306_v58  ;;  %v499_v58 = vld [vmem:[#allocation9 + $0x160] sm:$0xff] }
  0x62   :  { %387 = vmatpush.msrb.mxu0 %v305_v56  ;;  %406 = vmatpush.msrb.mxu1 %v339_v57  ;;  %v461_v57 = vld [vmem:[#allocation9 + $0x30] sm:$0xff] }
  0x63   :  { %446 = vmatpush.msrb.mxu3 %v340_v59  ;;  %428 = vmatpush.msrb.mxu2 %v304_v62  ;;  %v462_v59 = vld [vmem:[#allocation9 + $0x38] sm:$0xff]  ;;  %v497_v62 = vld [vmem:[#allocation9 + $0x150] sm:$0xff] }
  0x64   :  { %388 = vmatpush.msrb.mxu0 %v303_v60  ;;  %407 = vmatpush.msrb.mxu1 %v337_v61  ;;  %v500_v60 = vld [vmem:[#allocation9 + $0x168] sm:$0xff]  ;;  %v459_v61 = vld [vmem:[#allocation9 + $0x20] sm:$0xff] }
  0x65   :  { %447 = vmatpush.msrb.mxu3 %v338_v63  ;;  %565 = vmatpush.msra.mxu2 %v486_v3  ;;  %v460_v63 = vld [vmem:[#allocation9 + $0x28] sm:$0xff]  ;;  %v458_v3 = vld [vmem:[#allocation9 + $0x18] sm:$0xff] }
  0x66   :  { %408 = vmatpush.msrb.mxu1 %v335_v0  ;;  %525 = vmatpush.msra.mxu0 %v485_v2  ;;  %v498_v0 = vld [vmem:[#allocation9 + $0x158] sm:$0xff]  ;;  %v495_v2 = vld [vmem:[#allocation9 + $0x140] sm:$0xff] }
  0x67   :  { %448 = vmatpush.msrb.mxu3 %v336_v1  ;;  %566 = vmatpush.msra.mxu2 %v484_v5  ;;  %v457_v1 = vld [vmem:[#allocation9 + $0x10] sm:$0xff]  ;;  %v455_v5 = vld [vmem:[#allocation9] sm:$0xff] }
  0x68   :  { %526 = vmatpush.msra.mxu0 %v483_v4  ;;  %545 = vmatpush.msra.mxu1 %v517_v8  ;;  %v496_v4 = vld [vmem:[#allocation9 + $0x148] sm:$0xff]  ;;  %v494_v8 = vld [vmem:[#allocation9 + $0x138] sm:$0xff] }
  0x69   :  { %585 = vmatpush.msra.mxu3 %v518_v9  ;;  %567 = vmatpush.msra.mxu2 %v482_v7  ;;  %v456_v7 = vld [vmem:[#allocation9 + $0x8] sm:$0xff]  ;;  %v491_v9 = vld [vmem:[#allocation9 + $0x120] sm:$0xff] }
  0x6a   :  { %527 = vmatpush.msra.mxu0 %v481_v6  ;;  %546 = vmatpush.msra.mxu1 %v515_v10  ;;  %v493_v6 = vld [vmem:[#allocation9 + $0x130] sm:$0xff]  ;;  %v492_v10 = vld [vmem:[#allocation9 + $0x128] sm:$0xff] }
  0x6b   :  { %586 = vmatpush.msra.mxu3 %v516_v13  ;;  %568 = vmatpush.msra.mxu2 %v480_v12  ;;  %v490_v12 = vld [vmem:[#allocation9 + $0x118] sm:$0xff]  ;;  %v487_v13 = vld [vmem:[#allocation9 + $0x100] sm:$0xff] }
  0x6c   :  { %528 = vmatpush.msra.mxu0 %v479_v11  ;;  %547 = vmatpush.msra.mxu1 %v513_v14  ;;  %v489_v11 = vld [vmem:[#allocation9 + $0x110] sm:$0xff]  ;;  %v488_v14 = vld [vmem:[#allocation9 + $0x108] sm:$0xff] }
  0x6d   :  { %587 = vmatpush.msra.mxu3 %v514_v15  ;;  %569 = vmatpush.msra.mxu2 %v478_v17  ;;  %v787_v15 = vld [vmem:[#allocation12 + $0x5a0] sm:$0xff] }
  0x6e   :  { %529 = vmatpush.msra.mxu0 %v477_v16  ;;  %548 = vmatpush.msra.mxu1 %v511_v18  ;;  %v788_v16 = vld [vmem:[#allocation12 + $0x5a8] sm:$0xff]  ;;  %v775_v17 = vld [vmem:[#allocation12 + $0x540] sm:$0xff] }
  0x6f   :  { %588 = vmatpush.msra.mxu3 %v512_v19  ;;  %570 = vmatpush.msra.mxu2 %v476_v21  ;;  %v776_v18 = vld [vmem:[#allocation12 + $0x548] sm:$0xff]  ;;  %v763_v19 = vld [vmem:[#allocation12 + $0x4e0] sm:$0xff] }
  0x70   :  { %530 = vmatpush.msra.mxu0 %v475_v20  ;;  %549 = vmatpush.msra.mxu1 %v509_v22  ;;  %v764_v20 = vld [vmem:[#allocation12 + $0x4e8] sm:$0xff]  ;;  %v979_v21 = vld [vmem:[#allocation12 + $0xba0] sm:$0xff] }
  0x71   :  { %589 = vmatpush.msra.mxu3 %v510_v23  ;;  %571 = vmatpush.msra.mxu2 %v474_v25  ;;  %v980_v22 = vld [vmem:[#allocation12 + $0xba8] sm:$0xff]  ;;  %v967_v23 = vld [vmem:[#allocation12 + $0xb40] sm:$0xff] }
  0x72   :  { %531 = vmatpush.msra.mxu0 %v473_v24  ;;  %550 = vmatpush.msra.mxu1 %v507_v26  ;;  %v751_v24 = vld [vmem:[#allocation12 + $0x480] sm:$0xff]  ;;  %v752_v25 = vld [vmem:[#allocation12 + $0x488] sm:$0xff] }
  0x73   :  { %590 = vmatpush.msra.mxu3 %v508_v27  ;;  %572 = vmatpush.msra.mxu2 %v472_v29  ;;  %v968_v26 = vld [vmem:[#allocation12 + $0xb48] sm:$0xff]  ;;  %v955_v27 = vld [vmem:[#allocation12 + $0xae0] sm:$0xff] }
  0x74   :  { %532 = vmatpush.msra.mxu0 %v471_v28  ;;  %551 = vmatpush.msra.mxu1 %v505_v30  ;;  %v956_v28 = vld [vmem:[#allocation12 + $0xae8] sm:$0xff]  ;;  %v739_v29 = vld [vmem:[#allocation12 + $0x420] sm:$0xff] }
  0x75   :  { %591 = vmatpush.msra.mxu3 %v506_v31  ;;  %573 = vmatpush.msra.mxu2 %v470_v33  ;;  %v740_v30 = vld [vmem:[#allocation12 + $0x428] sm:$0xff]  ;;  %v943_v31 = vld [vmem:[#allocation12 + $0xa80] sm:$0xff] }
  0x76   :  { %533 = vmatpush.msra.mxu0 %v469_v32  ;;  %552 = vmatpush.msra.mxu1 %v503_v35  ;;  %v944_v32 = vld [vmem:[#allocation12 + $0xa88] sm:$0xff]  ;;  %v727_v33 = vld [vmem:[#allocation12 + $0x3c0] sm:$0xff] }
  0x77   :  { %592 = vmatpush.msra.mxu3 %v504_v36  ;;  %574 = vmatpush.msra.mxu2 %v468_v38  ;;  %v931_v35 = vld [vmem:[#allocation12 + $0xa20] sm:$0xff]  ;;  %v932_v36 = vld [vmem:[#allocation12 + $0xa28] sm:$0xff] }
  0x78   :  { %534 = vmatpush.msra.mxu0 %v467_v37  ;;  %553 = vmatpush.msra.mxu1 %v501_v39  ;;  %v715_v37 = vld [vmem:[#allocation12 + $0x360] sm:$0xff]  ;;  %v716_v38 = vld [vmem:[#allocation12 + $0x368] sm:$0xff]  ;;  %v367_v39 = vld [vmem:[#allocation7] sm:$0x3] }
  0x79   :  { %593 = vmatpush.msra.mxu3 %v502_v40  ;;  %575 = vmatpush.msra.mxu2 %v466_v43  ;;  %v919_v40 = vld [vmem:[#allocation12 + $0x9c0] sm:$0xff]  ;;  %v704_v43 = vld [vmem:[#allocation12 + $0x308] sm:$0xff] }
  0x7a   :  { %535 = vmatpush.msra.mxu0 %v465_v42  ;;  %554 = vmatpush.msra.mxu1 %v499_v58  ;;  %v703_v42 = vld [vmem:[#allocation12 + $0x300] sm:$0xff]  ;;  %v668_v58 = vld [vmem:[#allocation12 + $0x1e8] sm:$0xff] }
  0x7b   :  { %576 = vmatpush.msra.mxu2 %v464_v45  ;;  %594 = vmatpush.msra.mxu3 %v500_v60  ;;  %v908_v45 = vld [vmem:[#allocation12 + $0x968] sm:$0xff] }
  0x7c   :  { %536 = vmatpush.msra.mxu0 %v463_v44  ;;  %555 = vmatpush.msra.mxu1 %v497_v62  ;;  %v907_v44 = vld [vmem:[#allocation12 + $0x960] sm:$0xff]  ;;  %v872_v60 = vld [vmem:[#allocation12 + $0x848] sm:$0xff] }
  0x7d   :  { %577 = vmatpush.msra.mxu2 %v462_v59  ;;  %595 = vmatpush.msra.mxu3 %v498_v0  ;;  %v871_v59 = vld [vmem:[#allocation12 + $0x840] sm:$0xff] }
  0x7e   :  { %537 = vmatpush.msra.mxu0 %v461_v57  ;;  %556 = vmatpush.msra.mxu1 %v495_v2  ;;  %v667_v57 = vld [vmem:[#allocation12 + $0x1e0] sm:$0xff]  ;;  %v860_v2 = vld [vmem:[#allocation12 + $0x7e8] sm:$0xff] }
  0x7f   :  { %578 = vmatpush.msra.mxu2 %v460_v63  ;;  %596 = vmatpush.msra.mxu3 %v496_v4  ;;  %v655_v62 = vld [vmem:[#allocation12 + $0x180] sm:$0xff]  ;;  %v656_v63 = vld [vmem:[#allocation12 + $0x188] sm:$0xff] }
  0x80   :  { %538 = vmatpush.msra.mxu0 %v459_v61  ;;  %557 = vmatpush.msra.mxu1 %v493_v6  ;;  %v370_v61 = vperm.slane %v367_v39, 1  ;;  %v643_v4 = vld [vmem:[#allocation12 + $0x120] sm:$0xff] }
  0x81   :  { %579 = vmatpush.msra.mxu2 %v458_v3  ;;  %597 = vmatpush.msra.mxu3 %v494_v8 }
  0x82   :  { %539 = vmatpush.msra.mxu0 %v457_v1  ;;  %558 = vmatpush.msra.mxu1 %v491_v9  ;;  %v859_v1 = vld [vmem:[#allocation12 + $0x7e0] sm:$0xff] }
  0x83   :  { %580 = vmatpush.msra.mxu2 %v456_v7  ;;  %598 = vmatpush.msra.mxu3 %v492_v10  ;;  %v631_v9 = vld [vmem:[#allocation12 + $0xc0] sm:$0xff]  ;;  %v632_v10 = vld [vmem:[#allocation12 + $0xc8] sm:$0xff] }
  0x84   :  { %540 = vmatpush.msra.mxu0 %v455_v5  ;;  %559 = vmatpush.msra.mxu1 %v489_v11  ;;  %v644_v5 = vld [vmem:[#allocation12 + $0x128] sm:$0xff]  ;;  %v847_v11 = vld [vmem:[#allocation12 + $0x780] sm:$0xff] }
  0x85   :  { %599 = vmatpush.msra.mxu3 %v490_v12  ;;  %v848_v12 = vld [vmem:[#allocation12 + $0x788] sm:$0xff] }
  0x86   :  { %560 = vmatpush.msra.mxu1 %v487_v13  ;;  %v619_v13 = vld [vmem:[#allocation12 + $0x60] sm:$0xff] }
  0x87   :  { %600 = vmatpush.msra.mxu3 %v488_v14  ;;  %v620_v14 = vld [vmem:[#allocation12 + $0x68] sm:$0xff] }
  0xc2   :  { %v238_v46 = vpop.f32.mrf.mxu0 }
  0xc3   :  { %v239_v47 = vadd.f32 %v238_v46, %v217_v41  ;;  %v920_v41 = vld [vmem:[#allocation12 + $0x9c8] sm:$0xff]  ;;  %v369_v46 = vperm.slane %v367_v39, 0  ;;  %v969_v39 = vld [vmem:[#allocation12 + $0xb50] sm:$0xff] }
  0xc4   :  { %v258_v49 = vpop.f32.mrf.mxu1 }
  0xc5   :  { %v259_v50 = vadd.f32 %v258_v49, %v239_v47  ;;  %v691_v47 = vld [vmem:[#allocation12 + $0x2a0] sm:$0xff] }
  0xc6   :  { %v278_v51 = vpop.f32.mrf.mxu2  ;;  %v895_v49 = vld [vmem:[#allocation12 + $0x900] sm:$0xff] }
  0xc7   :  { %v298_v52 = vpop.f32.mrf.mxu3  ;;  %v301_v53 = vmax.f32 %v259_v50, 0.0  ;;  %v279_v54 = vadd.f32 %v278_v51, %v218_v48  ;;  %v692_v48 = vld [vmem:[#allocation12 + $0x2a8] sm:$0xff]  ;;  %v679_v51 = vld [vmem:[#allocation12 + $0x240] sm:$0xff] }
  0xc8   :  { %v896_v50 = vld [vmem:[#allocation12 + $0x908] sm:$0xff] }
  0xc9   :  { %v299_v55 = vadd.f32 %v298_v52, %v279_v54  ;;  %389 = vmatmul.f32.vlgmr.msrb.gmra.mxu0 %v301_v53  ;;  %429 = vmatmul.f32.vlgmr.msrb.gmra.mxu2 %v301_v53  ;;  %v680_v52 = vld [vmem:[#allocation12 + $0x248] sm:$0xff]  ;;  %v883_v54 = vld [vmem:[#allocation12 + $0x8a0] sm:$0xff] }
  0xca   :  { %1019 = vmatpush.msrb.mxu0 %v787_v15  ;;  %1059 = vmatpush.msrb.mxu2 %v788_v16  ;;  %v835_v16 = vld [vmem:[#allocation12 + $0x720] sm:$0xff] }
  0xcb   :  { %v302_v56 = vmax.f32 %v299_v55, 0.0  ;;  %v884_v55 = vld [vmem:[#allocation12 + $0x8a8] sm:$0xff] }
  0xcc   :  { %1020 = vmatpush.msrb.mxu0 %v775_v17  ;;  %1060 = vmatpush.msrb.mxu2 %v776_v18  ;;  %v836_v17 = vld [vmem:[#allocation12 + $0x728] sm:$0xff] }
  0xcd   :  { %409 = vmatmul.f32.vlgmr.msrb.gmra.mxu1 %v302_v56  ;;  %449 = vmatmul.f32.vlgmr.msrb.gmra.mxu3 %v302_v56 }
  0xce   :  { %1039 = vmatpush.msrb.mxu1 %v979_v21  ;;  %1079 = vmatpush.msrb.mxu3 %v980_v22  ;;  %v789_v22 = vld [vmem:[#allocation12 + $0x5b0] sm:$0xff] }
  0xcf   :  { %1021 = vmatpush.msrb.mxu0 %v763_v19  ;;  %1061 = vmatpush.msrb.mxu2 %v764_v20  ;;  %v607_v19 = vld [vmem:[#allocation12] sm:$0xff]  ;;  %v608_v20 = vld [vmem:[#allocation12 + $0x8] sm:$0xff] }
  0xd0   :  { %1040 = vmatpush.msrb.mxu1 %v967_v23  ;;  %1080 = vmatpush.msrb.mxu3 %v968_v26  ;;  %v790_v23 = vld [vmem:[#allocation12 + $0x5b8] sm:$0xff]  ;;  %v777_v26 = vld [vmem:[#allocation12 + $0x550] sm:$0xff] }
  0xd1   :  { %1022 = vmatpush.msrb.mxu0 %v751_v24  ;;  %1062 = vmatpush.msrb.mxu2 %v752_v25  ;;  %v823_v24 = vld [vmem:[#allocation12 + $0x6c0] sm:$0xff]  ;;  %v824_v25 = vld [vmem:[#allocation12 + $0x6c8] sm:$0xff] }
  0xd2   :  { %1041 = vmatpush.msrb.mxu1 %v955_v27  ;;  %1081 = vmatpush.msrb.mxu3 %v956_v28  ;;  %v778_v27 = vld [vmem:[#allocation12 + $0x558] sm:$0xff]  ;;  %v811_v28 = vld [vmem:[#allocation12 + $0x660] sm:$0xff] }
  0xd3   :  { %1023 = vmatpush.msrb.mxu0 %v739_v29  ;;  %1063 = vmatpush.msrb.mxu2 %v740_v30  ;;  %v812_v29 = vld [vmem:[#allocation12 + $0x668] sm:$0xff]  ;;  %v765_v30 = vld [vmem:[#allocation12 + $0x4f0] sm:$0xff] }
  0xd4   :  { %1042 = vmatpush.msrb.mxu1 %v943_v31  ;;  %1082 = vmatpush.msrb.mxu3 %v944_v32  ;;  %v766_v31 = vld [vmem:[#allocation12 + $0x4f8] sm:$0xff]  ;;  %v799_v32 = vld [vmem:[#allocation12 + $0x600] sm:$0xff] }
  0xd5   :  { %1024 = vmatpush.msrb.mxu0 %v727_v33  ;;  %1064 = vmatpush.msrb.mxu2 %v728_v34  ;;  %v800_v33 = vld [vmem:[#allocation12 + $0x608] sm:$0xff]  ;;  %v753_v34 = vld [vmem:[#allocation12 + $0x490] sm:$0xff] }
  0xd6   :  { %1043 = vmatpush.msrb.mxu1 %v931_v35  ;;  %1083 = vmatpush.msrb.mxu3 %v932_v36  ;;  %v981_v35 = vld [vmem:[#allocation12 + $0xbb0] sm:$0xff]  ;;  %v754_v36 = vld [vmem:[#allocation12 + $0x498] sm:$0xff] }
  0xd7   :  { %1025 = vmatpush.msrb.mxu0 %v715_v37  ;;  %1065 = vmatpush.msrb.mxu2 %v716_v38  ;;  %v982_v37 = vld [vmem:[#allocation12 + $0xbb8] sm:$0xff]  ;;  %v741_v38 = vld [vmem:[#allocation12 + $0x430] sm:$0xff] }
  0xd8   :  { %1044 = vmatpush.msrb.mxu1 %v919_v40  ;;  %1084 = vmatpush.msrb.mxu3 %v920_v41  ;;  %v742_v40 = vld [vmem:[#allocation12 + $0x438] sm:$0xff] }
  0xd9   :  { %1026 = vmatpush.msrb.mxu0 %v703_v42  ;;  %1066 = vmatpush.msrb.mxu2 %v704_v43  ;;  %v970_v41 = vld [vmem:[#allocation12 + $0xb58] sm:$0xff]  ;;  %v729_v42 = vld [vmem:[#allocation12 + $0x3d0] sm:$0xff] }
  0xda   :  { %1045 = vmatpush.msrb.mxu1 %v907_v44  ;;  %1085 = vmatpush.msrb.mxu3 %v908_v45  ;;  %v957_v43 = vld [vmem:[#allocation12 + $0xaf0] sm:$0xff]  ;;  %v730_v44 = vld [vmem:[#allocation12 + $0x3d8] sm:$0xff] }
  0xdb   :  { %1027 = vmatpush.msrb.mxu0 %v691_v47  ;;  %1067 = vmatpush.msrb.mxu2 %v692_v48  ;;  %v958_v45 = vld [vmem:[#allocation12 + $0xaf8] sm:$0xff]  ;;  %v945_v47 = vld [vmem:[#allocation12 + $0xa90] sm:$0xff] }
  0xdc   :  { %1046 = vmatpush.msrb.mxu1 %v895_v49  ;;  %1086 = vmatpush.msrb.mxu3 %v896_v50  ;;  %v718_v48 = vld [vmem:[#allocation12 + $0x378] sm:$0xff]  ;;  %v705_v50 = vld [vmem:[#allocation12 + $0x310] sm:$0xff] }
  0xdd   :  { %1028 = vmatpush.msrb.mxu0 %v679_v51  ;;  %1068 = vmatpush.msrb.mxu2 %v680_v52  ;;  %v946_v49 = vld [vmem:[#allocation12 + $0xa98] sm:$0xff]  ;;  %v933_v51 = vld [vmem:[#allocation12 + $0xa30] sm:$0xff] }
  0xde   :  { %1047 = vmatpush.msrb.mxu1 %v883_v54  ;;  %1087 = vmatpush.msrb.mxu3 %v884_v55  ;;  %v706_v52 = vld [vmem:[#allocation12 + $0x318] sm:$0xff]  ;;  %v693_v54 = vld [vmem:[#allocation12 + $0x2b0] sm:$0xff] }
  0xdf   :  { %1029 = vmatpush.msrb.mxu0 %v667_v57  ;;  %1069 = vmatpush.msrb.mxu2 %v668_v58  ;;  %v921_v55 = vld [vmem:[#allocation12 + $0x9d0] sm:$0xff]  ;;  %v922_v57 = vld [vmem:[#allocation12 + $0x9d8] sm:$0xff] }
  0xe0   :  { %1048 = vmatpush.msrb.mxu1 %v871_v59  ;;  %1088 = vmatpush.msrb.mxu3 %v872_v60  ;;  %v681_v58 = vld [vmem:[#allocation12 + $0x250] sm:$0xff]  ;;  %v682_v60 = vld [vmem:[#allocation12 + $0x258] sm:$0xff] }
  0xe1   :  { %1030 = vmatpush.msrb.mxu0 %v655_v62  ;;  %1070 = vmatpush.msrb.mxu2 %v656_v63  ;;  %v909_v59 = vld [vmem:[#allocation12 + $0x970] sm:$0xff] }
  0xe2   :  { %1049 = vmatpush.msrb.mxu1 %v859_v1  ;;  %1089 = vmatpush.msrb.mxu3 %v860_v2  ;;  %v669_v62 = vld [vmem:[#allocation12 + $0x1f0] sm:$0xff]  ;;  %v898_v1 = vld [vmem:[#allocation12 + $0x918] sm:$0xff] }
  0xe3   :  { %1031 = vmatpush.msrb.mxu0 %v643_v4  ;;  %1071 = vmatpush.msrb.mxu2 %v644_v5  ;;  %v897_v63 = vld [vmem:[#allocation12 + $0x910] sm:$0xff]  ;;  %v658_v4 = vld [vmem:[#allocation12 + $0x198] sm:$0xff] }
  0xe4   :  { %1050 = vmatpush.msrb.mxu1 %v847_v11  ;;  %1090 = vmatpush.msrb.mxu3 %v848_v12  ;;  %v657_v2 = vld [vmem:[#allocation12 + $0x190] sm:$0xff]  ;;  %v886_v5 = vld [vmem:[#allocation12 + $0x8b8] sm:$0xff] }
  0xe5   :  { %1032 = vmatpush.msrb.mxu0 %v631_v9  ;;  %1072 = vmatpush.msrb.mxu2 %v632_v10  ;;  %v874_v9 = vld [vmem:[#allocation12 + $0x858] sm:$0xff]  ;;  %v633_v10 = vld [vmem:[#allocation12 + $0xd0] sm:$0xff] }
  0xe6   :  { %1051 = vmatpush.msrb.mxu1 %v835_v16  ;;  %1091 = vmatpush.msrb.mxu3 %v836_v17  ;;  %v861_v11 = vld [vmem:[#allocation12 + $0x7f0] sm:$0xff]  ;;  %v634_v12 = vld [vmem:[#allocation12 + $0xd8] sm:$0xff] }
  0xe7   :  { %1033 = vmatpush.msrb.mxu0 %v619_v13  ;;  %1073 = vmatpush.msrb.mxu2 %v620_v14  ;;  %v862_v13 = vld [vmem:[#allocation12 + $0x7f8] sm:$0xff]  ;;  %v621_v14 = vld [vmem:[#allocation12 + $0x70] sm:$0xff] }
  0xe8   :  { %1052 = vmatpush.msrb.mxu1 %v823_v24  ;;  %1092 = vmatpush.msrb.mxu3 %v824_v25  ;;  %v622_v16 = vld [vmem:[#allocation12 + $0x78] sm:$0xff]  ;;  %v813_v24 = vld [vmem:[#allocation12 + $0x670] sm:$0xff] }
  0xe9   :  { %1034 = vmatpush.msrb.mxu0 %v607_v19  ;;  %1074 = vmatpush.msrb.mxu2 %v608_v20  ;;  %v850_v17 = vld [vmem:[#allocation12 + $0x798] sm:$0xff]  ;;  %v837_v19 = vld [vmem:[#allocation12 + $0x730] sm:$0xff] }
  0xea   :  { %1053 = vmatpush.msrb.mxu1 %v811_v28  ;;  %1093 = vmatpush.msrb.mxu3 %v812_v29  ;;  %v610_v20 = vld [vmem:[#allocation12 + $0x18] sm:$0xff] }
  0xeb   :  { %v814_v25 = vld [vmem:[#allocation12 + $0x678] sm:$0xff] }
  0xec   :  { %1054 = vmatpush.msrb.mxu1 %v799_v32  ;;  %1094 = vmatpush.msrb.mxu3 %v800_v33  ;;  %v519_v28 = vld [vmem:[#allocation10] sm:$0x3] }
  0xed   :  { %v521_v29 = vperm.slane %v519_v28, 0 }
 0x146   :  { %v390_v53 = vpop.f32.mrf.mxu0 }
 0x147   :  { %v391_v56 = vadd.f32 %v390_v53, %v369_v46  ;;  %v717_v46 = vld [vmem:[#allocation12 + $0x370] sm:$0xff]  ;;  %v934_v53 = vld [vmem:[#allocation12 + $0xa38] sm:$0xff] }
 0x14a   :  { %v410_v0 = vpop.f32.mrf.mxu1 }
 0x14b   :  { %v411_v3 = vadd.f32 %v410_v0, %v391_v56  ;;  %v694_v56 = vld [vmem:[#allocation12 + $0x2b8] sm:$0xff] }
 0x14c   :  { %v430_v6 = vpop.f32.mrf.mxu2  ;;  %v670_v0 = vld [vmem:[#allocation12 + $0x1f8] sm:$0xff] }
 0x14d   :  { %v453_v7 = vmax.f32 %v411_v3, 0.0  ;;  %v431_v8 = vadd.f32 %v430_v6, %v370_v61  ;;  %v910_v61 = vld [vmem:[#allocation12 + $0x978] sm:$0xff]  ;;  %v885_v3 = vld [vmem:[#allocation12 + $0x8b0] sm:$0xff] }
 0x14e   :  { %v645_v6 = vld [vmem:[#allocation12 + $0x130] sm:$0xff] }
 0x14f   :  { %541 = vmatmul.f32.vlgmr.msra.gmra.mxu0 %v453_v7  ;;  %581 = vmatmul.f32.vlgmr.msra.gmra.mxu2 %v453_v7  ;;  %v873_v7 = vld [vmem:[#allocation12 + $0x850] sm:$0xff] }
 0x150   :  { %v450_v15 = vpop.f32.mrf.mxu3  ;;  %1099 = vmatpush.msra.mxu0 %v789_v22  ;;  %1139 = vmatpush.msra.mxu2 %v790_v23  ;;  %v825_v22 = vld [vmem:[#allocation12 + $0x6d0] sm:$0xff]  ;;  %v826_v23 = vld [vmem:[#allocation12 + $0x6d8] sm:$0xff] }
 0x151   :  { %v451_v18 = vadd.f32 %v450_v15, %v431_v8  ;;  %v646_v8 = vld [vmem:[#allocation12 + $0x138] sm:$0xff]  ;;  %v849_v15 = vld [vmem:[#allocation12 + $0x790] sm:$0xff] }
 0x152   :  { %1100 = vmatpush.msra.mxu0 %v777_v26  ;;  %1140 = vmatpush.msra.mxu2 %v778_v27  ;;  %v801_v26 = vld [vmem:[#allocation12 + $0x610] sm:$0xff]  ;;  %v802_v27 = vld [vmem:[#allocation12 + $0x618] sm:$0xff] }
 0x153   :  { %v454_v21 = vmax.f32 %v451_v18, 0.0  ;;  %v609_v18 = vld [vmem:[#allocation12 + $0x10] sm:$0xff] }
 0x154   :  { %1101 = vmatpush.msra.mxu0 %v765_v30  ;;  %1141 = vmatpush.msra.mxu2 %v766_v31 }
 0x155   :  { %561 = vmatmul.f32.vlgmr.msra.gmra.mxu1 %v454_v21  ;;  %601 = vmatmul.f32.vlgmr.msra.gmra.mxu3 %v454_v21  ;;  %v838_v21 = vld [vmem:[#allocation12 + $0x738] sm:$0xff] }
 0x156   :  { %1102 = vmatpush.msra.mxu0 %v753_v34  ;;  %1119 = vmatpush.msra.mxu1 %v981_v35  ;;  %v522_v34 = vperm.slane %v519_v28, 1  ;;  %v851_v28 = vld [vmem:[#allocation12 + $0x7a0] sm:$0xff] }
 0x157   :  { %1142 = vmatpush.msra.mxu2 %v754_v36  ;;  %1159 = vmatpush.msra.mxu3 %v982_v37  ;;  %v791_v37 = vld [vmem:[#allocation12 + $0x5c0] sm:$0xff] }
 0x158   :  { %1103 = vmatpush.msra.mxu0 %v741_v38  ;;  %1120 = vmatpush.msra.mxu1 %v969_v39  ;;  %v792_v38 = vld [vmem:[#allocation12 + $0x5c8] sm:$0xff] }
 0x159   :  { %1143 = vmatpush.msra.mxu2 %v742_v40  ;;  %1160 = vmatpush.msra.mxu3 %v970_v41  ;;  %v779_v40 = vld [vmem:[#allocation12 + $0x560] sm:$0xff]  ;;  %v780_v41 = vld [vmem:[#allocation12 + $0x568] sm:$0xff] }
 0x15a   :  { %1104 = vmatpush.msra.mxu0 %v729_v42  ;;  %1121 = vmatpush.msra.mxu1 %v957_v43 }
 0x15b   :  { %1144 = vmatpush.msra.mxu2 %v730_v44  ;;  %1161 = vmatpush.msra.mxu3 %v958_v45  ;;  %v767_v44 = vld [vmem:[#allocation12 + $0x500] sm:$0xff]  ;;  %v768_v45 = vld [vmem:[#allocation12 + $0x508] sm:$0xff] }
 0x15c   :  { %1105 = vmatpush.msra.mxu0 %v717_v46  ;;  %1122 = vmatpush.msra.mxu1 %v945_v47  ;;  %v755_v47 = vld [vmem:[#allocation12 + $0x4a0] sm:$0xff] }
 0x15d   :  { %1145 = vmatpush.msra.mxu2 %v718_v48  ;;  %1162 = vmatpush.msra.mxu3 %v946_v49  ;;  %v983_v48 = vld [vmem:[#allocation12 + $0xbc0] sm:$0xff]  ;;  %v756_v49 = vld [vmem:[#allocation12 + $0x4a8] sm:$0xff] }
 0x15e   :  { %1106 = vmatpush.msra.mxu0 %v705_v50  ;;  %1123 = vmatpush.msra.mxu1 %v933_v51  ;;  %v984_v50 = vld [vmem:[#allocation12 + $0xbc8] sm:$0xff]  ;;  %v743_v51 = vld [vmem:[#allocation12 + $0x440] sm:$0xff] }
 0x15f   :  { %1146 = vmatpush.msra.mxu2 %v706_v52  ;;  %1163 = vmatpush.msra.mxu3 %v934_v53  ;;  %v971_v52 = vld [vmem:[#allocation12 + $0xb60] sm:$0xff]  ;;  %v744_v53 = vld [vmem:[#allocation12 + $0x448] sm:$0xff] }
 0x160   :  { %1107 = vmatpush.msra.mxu0 %v693_v54  ;;  %1124 = vmatpush.msra.mxu1 %v921_v55  ;;  %v972_v54 = vld [vmem:[#allocation12 + $0xb68] sm:$0xff]  ;;  %v731_v55 = vld [vmem:[#allocation12 + $0x3e0] sm:$0xff] }
 0x161   :  { %1147 = vmatpush.msra.mxu2 %v694_v56  ;;  %1164 = vmatpush.msra.mxu3 %v922_v57  ;;  %v959_v56 = vld [vmem:[#allocation12 + $0xb00] sm:$0xff]  ;;  %v732_v57 = vld [vmem:[#allocation12 + $0x3e8] sm:$0xff] }
 0x162   :  { %1108 = vmatpush.msra.mxu0 %v681_v58  ;;  %1125 = vmatpush.msra.mxu1 %v909_v59  ;;  %v960_v58 = vld [vmem:[#allocation12 + $0xb08] sm:$0xff]  ;;  %v719_v59 = vld [vmem:[#allocation12 + $0x380] sm:$0xff] }
 0x163   :  { %1148 = vmatpush.msra.mxu2 %v682_v60  ;;  %1165 = vmatpush.msra.mxu3 %v910_v61  ;;  %v947_v60 = vld [vmem:[#allocation12 + $0xaa0] sm:$0xff]  ;;  %v720_v61 = vld [vmem:[#allocation12 + $0x388] sm:$0xff] }
 0x164   :  { %1109 = vmatpush.msra.mxu0 %v669_v62  ;;  %1126 = vmatpush.msra.mxu1 %v897_v63  ;;  %v948_v62 = vld [vmem:[#allocation12 + $0xaa8] sm:$0xff]  ;;  %v707_v63 = vld [vmem:[#allocation12 + $0x320] sm:$0xff] }
 0x165   :  { %1149 = vmatpush.msra.mxu2 %v670_v0  ;;  %1166 = vmatpush.msra.mxu3 %v898_v1  ;;  %v935_v0 = vld [vmem:[#allocation12 + $0xa40] sm:$0xff]  ;;  %v708_v1 = vld [vmem:[#allocation12 + $0x328] sm:$0xff] }
 0x166   :  { %1110 = vmatpush.msra.mxu0 %v657_v2  ;;  %1127 = vmatpush.msra.mxu1 %v885_v3  ;;  %v936_v2 = vld [vmem:[#allocation12 + $0xa48] sm:$0xff]  ;;  %v695_v3 = vld [vmem:[#allocation12 + $0x2c0] sm:$0xff] }
 0x167   :  { %1150 = vmatpush.msra.mxu2 %v658_v4  ;;  %1167 = vmatpush.msra.mxu3 %v886_v5  ;;  %v923_v4 = vld [vmem:[#allocation12 + $0x9e0] sm:$0xff]  ;;  %v696_v5 = vld [vmem:[#allocation12 + $0x2c8] sm:$0xff] }
 0x168   :  { %1111 = vmatpush.msra.mxu0 %v645_v6  ;;  %1128 = vmatpush.msra.mxu1 %v873_v7  ;;  %v924_v6 = vld [vmem:[#allocation12 + $0x9e8] sm:$0xff]  ;;  %v683_v7 = vld [vmem:[#allocation12 + $0x260] sm:$0xff] }
 0x169   :  { %1151 = vmatpush.msra.mxu2 %v646_v8  ;;  %1168 = vmatpush.msra.mxu3 %v874_v9  ;;  %v911_v8 = vld [vmem:[#allocation12 + $0x980] sm:$0xff]  ;;  %v684_v9 = vld [vmem:[#allocation12 + $0x268] sm:$0xff] }
 0x16a   :  { %1112 = vmatpush.msra.mxu0 %v633_v10  ;;  %1129 = vmatpush.msra.mxu1 %v861_v11  ;;  %v912_v10 = vld [vmem:[#allocation12 + $0x988] sm:$0xff]  ;;  %v671_v11 = vld [vmem:[#allocation12 + $0x200] sm:$0xff] }
 0x16b   :  { %1152 = vmatpush.msra.mxu2 %v634_v12  ;;  %1169 = vmatpush.msra.mxu3 %v862_v13  ;;  %v899_v12 = vld [vmem:[#allocation12 + $0x920] sm:$0xff]  ;;  %v672_v13 = vld [vmem:[#allocation12 + $0x208] sm:$0xff] }
 0x16c   :  { %1113 = vmatpush.msra.mxu0 %v621_v14  ;;  %1130 = vmatpush.msra.mxu1 %v849_v15  ;;  %v900_v14 = vld [vmem:[#allocation12 + $0x928] sm:$0xff]  ;;  %v659_v15 = vld [vmem:[#allocation12 + $0x1a0] sm:$0xff] }
 0x16d   :  { %1153 = vmatpush.msra.mxu2 %v622_v16  ;;  %1170 = vmatpush.msra.mxu3 %v850_v17  ;;  %v887_v16 = vld [vmem:[#allocation12 + $0x8c0] sm:$0xff]  ;;  %v660_v17 = vld [vmem:[#allocation12 + $0x1a8] sm:$0xff] }
 0x16e   :  { %1114 = vmatpush.msra.mxu0 %v609_v18  ;;  %1131 = vmatpush.msra.mxu1 %v837_v19  ;;  %v888_v18 = vld [vmem:[#allocation12 + $0x8c8] sm:$0xff]  ;;  %v647_v19 = vld [vmem:[#allocation12 + $0x140] sm:$0xff] }
 0x16f   :  { %1154 = vmatpush.msra.mxu2 %v610_v20  ;;  %1171 = vmatpush.msra.mxu3 %v838_v21  ;;  %v875_v20 = vld [vmem:[#allocation12 + $0x860] sm:$0xff]  ;;  %v648_v21 = vld [vmem:[#allocation12 + $0x148] sm:$0xff] }
 0x170   :  { %1132 = vmatpush.msra.mxu1 %v825_v22  ;;  %v876_v22 = vld [vmem:[#allocation12 + $0x868] sm:$0xff] }
 0x171   :  { %1172 = vmatpush.msra.mxu3 %v826_v23  ;;  %v635_v23 = vld [vmem:[#allocation12 + $0xe0] sm:$0xff] }
 0x172   :  { %1133 = vmatpush.msra.mxu1 %v813_v24  ;;  %v863_v24 = vld [vmem:[#allocation12 + $0x800] sm:$0xff] }
 0x173   :  { %1173 = vmatpush.msra.mxu3 %v814_v25  ;;  %v636_v25 = vld [vmem:[#allocation12 + $0xe8] sm:$0xff] }
 0x174   :  { %1134 = vmatpush.msra.mxu1 %v801_v26  ;;  %v864_v26 = vld [vmem:[#allocation12 + $0x808] sm:$0xff] }
 0x175   :  { %1174 = vmatpush.msra.mxu3 %v802_v27  ;;  %v623_v27 = vld [vmem:[#allocation12 + $0x80] sm:$0xff] }
 0x1cc   :  { %v542_v30 = vpop.f32.mrf.mxu0 }
 0x1cd   :  { %v543_v31 = vadd.f32 %v542_v30, %v521_v29  ;;  %v624_v29 = vld [vmem:[#allocation12 + $0x88] sm:$0xff] }
 0x1ce   :  { %v852_v30 = vld [vmem:[#allocation12 + $0x7a8] sm:$0xff] }
 0x1d2   :  { %v562_v32 = vpop.f32.mrf.mxu1  ;;  %v582_v35 = vpop.f32.mrf.mxu2 }
 0x1d3   :  { %v563_v33 = vadd.f32 %v562_v32, %v543_v31  ;;  %v583_v39 = vadd.f32 %v582_v35, %v522_v34  ;;  %v611_v31 = vld [vmem:[#allocation12 + $0x20] sm:$0xff]  ;;  %v840_v34 = vld [vmem:[#allocation12 + $0x748] sm:$0xff]  ;;  %v793_v35 = vld [vmem:[#allocation12 + $0x5d0] sm:$0xff] }
 0x1d4   :  { %v839_v32 = vld [vmem:[#allocation12 + $0x740] sm:$0xff] }
 0x1d5   :  { %v1826_v36 = vmax.f32 %v563_v33, 0.0  ;;  %v612_v33 = vld [vmem:[#allocation12 + $0x28] sm:$0xff] }
 0x1d7   :  { %1035 = vmatmul.f32.vlgmr.msrb.gmra.mxu0 %v1826_v36  ;;  %1075 = vmatmul.f32.vlgmr.msrb.gmra.mxu2 %v1826_v36 }
 0x1d8   :  { %1179 = vmatpush.msrb.mxu0 %v791_v37  ;;  %1219 = vmatpush.msrb.mxu2 %v792_v38  ;;  %v602_v42 = vpop.f32.mrf.mxu3  ;;  %v794_v37 = vld [vmem:[#allocation12 + $0x5d8] sm:$0xff]  ;;  %v827_v38 = vld [vmem:[#allocation12 + $0x6e0] sm:$0xff] }
 0x1d9   :  { %v603_v43 = vadd.f32 %v602_v42, %v583_v39  ;;  %v828_v39 = vld [vmem:[#allocation12 + $0x6e8] sm:$0xff]  ;;  %v815_v42 = vld [vmem:[#allocation12 + $0x680] sm:$0xff] }
 0x1da   :  { %1180 = vmatpush.msrb.mxu0 %v779_v40  ;;  %1220 = vmatpush.msrb.mxu2 %v780_v41  ;;  %v781_v40 = vld [vmem:[#allocation12 + $0x570] sm:$0xff]  ;;  %v782_v41 = vld [vmem:[#allocation12 + $0x578] sm:$0xff] }
 0x1db   :  { %v1830_v46 = vmax.f32 %v603_v43, 0.0  ;;  %v816_v43 = vld [vmem:[#allocation12 + $0x688] sm:$0xff] }
 0x1dc   :  { %1181 = vmatpush.msrb.mxu0 %v767_v44  ;;  %1221 = vmatpush.msrb.mxu2 %v768_v45  ;;  %v769_v44 = vld [vmem:[#allocation12 + $0x510] sm:$0xff]  ;;  %v770_v45 = vld [vmem:[#allocation12 + $0x518] sm:$0xff] }
 0x1dd   :  { %1055 = vmatmul.f32.vlgmr.msrb.gmra.mxu1 %v1830_v46  ;;  %1095 = vmatmul.f32.vlgmr.msrb.gmra.mxu3 %v1830_v46 }
 0x1de   :  { %1182 = vmatpush.msrb.mxu0 %v755_v47  ;;  %1199 = vmatpush.msrb.mxu1 %v983_v48  ;;  %v803_v47 = vld [vmem:[#allocation12 + $0x620] sm:$0xff]  ;;  %v804_v48 = vld [vmem:[#allocation12 + $0x628] sm:$0xff] }
 0x1df   :  { %1222 = vmatpush.msrb.mxu2 %v756_v49  ;;  %1239 = vmatpush.msrb.mxu3 %v984_v50  ;;  %v757_v49 = vld [vmem:[#allocation12 + $0x4b0] sm:$0xff] }
 0x1e0   :  { %1115 = vmatmul.f32.vlgmr.msra.gmra.mxu0 %v1826_v36  ;;  %1155 = vmatmul.f32.vlgmr.msra.gmra.mxu2 %v1826_v36  ;;  %v985_v50 = vld [vmem:[#allocation12 + $0xbd0] sm:$0xff] }
 0x1e1   :  { %1183 = vmatpush.msrb.mxu0 %v743_v51  ;;  %1200 = vmatpush.msrb.mxu1 %v971_v52  ;;  %v758_v51 = vld [vmem:[#allocation12 + $0x4b8] sm:$0xff] }
 0x1e2   :  { %1223 = vmatpush.msrb.mxu2 %v744_v53  ;;  %1240 = vmatpush.msrb.mxu3 %v972_v54  ;;  %v986_v52 = vld [vmem:[#allocation12 + $0xbd8] sm:$0xff]  ;;  %v745_v53 = vld [vmem:[#allocation12 + $0x450] sm:$0xff] }
 0x1e3   :  { %1184 = vmatpush.msrb.mxu0 %v731_v55  ;;  %1201 = vmatpush.msrb.mxu1 %v959_v56  ;;  %v973_v54 = vld [vmem:[#allocation12 + $0xb70] sm:$0xff]  ;;  %v746_v55 = vld [vmem:[#allocation12 + $0x458] sm:$0xff] }
 0x1e4   :  { %1224 = vmatpush.msrb.mxu2 %v732_v57  ;;  %1241 = vmatpush.msrb.mxu3 %v960_v58  ;;  %v974_v56 = vld [vmem:[#allocation12 + $0xb78] sm:$0xff]  ;;  %v733_v57 = vld [vmem:[#allocation12 + $0x3f0] sm:$0xff] }
 0x1e5   :  { %1185 = vmatpush.msrb.mxu0 %v719_v59  ;;  %1202 = vmatpush.msrb.mxu1 %v947_v60  ;;  %v961_v58 = vld [vmem:[#allocation12 + $0xb10] sm:$0xff]  ;;  %v734_v59 = vld [vmem:[#allocation12 + $0x3f8] sm:$0xff] }
 0x1e6   :  { %1225 = vmatpush.msrb.mxu2 %v720_v61  ;;  %1242 = vmatpush.msrb.mxu3 %v948_v62  ;;  %v962_v60 = vld [vmem:[#allocation12 + $0xb18] sm:$0xff]  ;;  %v721_v61 = vld [vmem:[#allocation12 + $0x390] sm:$0xff] }
 0x1e7   :  { %1135 = vmatmul.f32.vlgmr.msra.gmra.mxu1 %v1830_v46  ;;  %1175 = vmatmul.f32.vlgmr.msra.gmra.mxu3 %v1830_v46  ;;  %v949_v62 = vld [vmem:[#allocation12 + $0xab0] sm:$0xff] }
 0x1e8   :  { %1186 = vmatpush.msrb.mxu0 %v707_v63  ;;  %1203 = vmatpush.msrb.mxu1 %v935_v0  ;;  %v722_v63 = vld [vmem:[#allocation12 + $0x398] sm:$0xff] }
 0x1e9   :  { %1226 = vmatpush.msrb.mxu2 %v708_v1  ;;  %1243 = vmatpush.msrb.mxu3 %v936_v2  ;;  %v950_v0 = vld [vmem:[#allocation12 + $0xab8] sm:$0xff]  ;;  %v709_v1 = vld [vmem:[#allocation12 + $0x330] sm:$0xff] }
 0x1ea   :  { %1187 = vmatpush.msrb.mxu0 %v695_v3  ;;  %1204 = vmatpush.msrb.mxu1 %v923_v4  ;;  %v937_v2 = vld [vmem:[#allocation12 + $0xa50] sm:$0xff]  ;;  %v710_v3 = vld [vmem:[#allocation12 + $0x338] sm:$0xff] }
 0x1eb   :  { %1227 = vmatpush.msrb.mxu2 %v696_v5  ;;  %1244 = vmatpush.msrb.mxu3 %v924_v6  ;;  %v938_v4 = vld [vmem:[#allocation12 + $0xa58] sm:$0xff]  ;;  %v697_v5 = vld [vmem:[#allocation12 + $0x2d0] sm:$0xff] }
 0x1ec   :  { %1188 = vmatpush.msrb.mxu0 %v683_v7  ;;  %1205 = vmatpush.msrb.mxu1 %v911_v8  ;;  %v925_v6 = vld [vmem:[#allocation12 + $0x9f0] sm:$0xff]  ;;  %v698_v7 = vld [vmem:[#allocation12 + $0x2d8] sm:$0xff] }
 0x1ed   :  { %1228 = vmatpush.msrb.mxu2 %v684_v9  ;;  %1245 = vmatpush.msrb.mxu3 %v912_v10  ;;  %v926_v8 = vld [vmem:[#allocation12 + $0x9f8] sm:$0xff]  ;;  %v685_v9 = vld [vmem:[#allocation12 + $0x270] sm:$0xff] }
 0x1ee   :  { %1189 = vmatpush.msrb.mxu0 %v671_v11  ;;  %1206 = vmatpush.msrb.mxu1 %v899_v12  ;;  %v913_v10 = vld [vmem:[#allocation12 + $0x990] sm:$0xff]  ;;  %v686_v11 = vld [vmem:[#allocation12 + $0x278] sm:$0xff] }
 0x1ef   :  { %1229 = vmatpush.msrb.mxu2 %v672_v13  ;;  %1246 = vmatpush.msrb.mxu3 %v900_v14  ;;  %v914_v12 = vld [vmem:[#allocation12 + $0x998] sm:$0xff]  ;;  %v673_v13 = vld [vmem:[#allocation12 + $0x210] sm:$0xff] }
 0x1f0   :  { %1190 = vmatpush.msrb.mxu0 %v659_v15  ;;  %1207 = vmatpush.msrb.mxu1 %v887_v16  ;;  %v901_v14 = vld [vmem:[#allocation12 + $0x930] sm:$0xff]  ;;  %v674_v15 = vld [vmem:[#allocation12 + $0x218] sm:$0xff] }
 0x1f1   :  { %1230 = vmatpush.msrb.mxu2 %v660_v17  ;;  %1247 = vmatpush.msrb.mxu3 %v888_v18  ;;  %v902_v16 = vld [vmem:[#allocation12 + $0x938] sm:$0xff]  ;;  %v661_v17 = vld [vmem:[#allocation12 + $0x1b0] sm:$0xff] }
 0x1f2   :  { %1191 = vmatpush.msrb.mxu0 %v647_v19  ;;  %1208 = vmatpush.msrb.mxu1 %v875_v20  ;;  %v889_v18 = vld [vmem:[#allocation12 + $0x8d0] sm:$0xff]  ;;  %v662_v19 = vld [vmem:[#allocation12 + $0x1b8] sm:$0xff] }
 0x1f3   :  { %1231 = vmatpush.msrb.mxu2 %v648_v21  ;;  %1248 = vmatpush.msrb.mxu3 %v876_v22  ;;  %v890_v20 = vld [vmem:[#allocation12 + $0x8d8] sm:$0xff]  ;;  %v649_v21 = vld [vmem:[#allocation12 + $0x150] sm:$0xff] }
 0x1f4   :  { %1192 = vmatpush.msrb.mxu0 %v635_v23  ;;  %1209 = vmatpush.msrb.mxu1 %v863_v24  ;;  %v877_v22 = vld [vmem:[#allocation12 + $0x870] sm:$0xff]  ;;  %v650_v23 = vld [vmem:[#allocation12 + $0x158] sm:$0xff] }
 0x1f5   :  { %1232 = vmatpush.msrb.mxu2 %v636_v25  ;;  %1249 = vmatpush.msrb.mxu3 %v864_v26  ;;  %v878_v24 = vld [vmem:[#allocation12 + $0x878] sm:$0xff]  ;;  %v637_v25 = vld [vmem:[#allocation12 + $0xf0] sm:$0xff] }
 0x1f6   :  { %1193 = vmatpush.msrb.mxu0 %v623_v27  ;;  %1210 = vmatpush.msrb.mxu1 %v851_v28  ;;  %v865_v26 = vld [vmem:[#allocation12 + $0x810] sm:$0xff]  ;;  %v638_v27 = vld [vmem:[#allocation12 + $0xf8] sm:$0xff] }
 0x1f7   :  { %1233 = vmatpush.msrb.mxu2 %v624_v29  ;;  %1250 = vmatpush.msrb.mxu3 %v852_v30  ;;  %v866_v28 = vld [vmem:[#allocation12 + $0x818] sm:$0xff]  ;;  %v625_v29 = vld [vmem:[#allocation12 + $0x90] sm:$0xff] }
 0x1f8   :  { %1194 = vmatpush.msrb.mxu0 %v611_v31  ;;  %1211 = vmatpush.msrb.mxu1 %v839_v32  ;;  %v853_v30 = vld [vmem:[#allocation12 + $0x7b0] sm:$0xff]  ;;  %v626_v31 = vld [vmem:[#allocation12 + $0x98] sm:$0xff] }
 0x1f9   :  { %1234 = vmatpush.msrb.mxu2 %v612_v33  ;;  %1251 = vmatpush.msrb.mxu3 %v840_v34  ;;  %v854_v32 = vld [vmem:[#allocation12 + $0x7b8] sm:$0xff]  ;;  %v613_v33 = vld [vmem:[#allocation12 + $0x30] sm:$0xff] }
 0x1fa   :  { %1195 = vmatmul.f32.vlgmr.msrb.gmra.mxu0 %v1826_v36  ;;  %1235 = vmatmul.f32.vlgmr.msrb.gmra.mxu2 %v1826_v36  ;;  %v841_v34 = vld [vmem:[#allocation12 + $0x750] sm:$0xff] }
 0x1fb   :  { %1259 = vmatpush.msra.mxu0 %v793_v35  ;;  %1299 = vmatpush.msra.mxu2 %v794_v37  ;;  %v614_v35 = vld [vmem:[#allocation12 + $0x38] sm:$0xff] }
 0x1fc   :  { %1212 = vmatpush.msrb.mxu1 %v827_v38  ;;  %1252 = vmatpush.msrb.mxu3 %v828_v39  ;;  %v842_v37 = vld [vmem:[#allocation12 + $0x758] sm:$0xff]  ;;  %v795_v38 = vld [vmem:[#allocation12 + $0x5e0] sm:$0xff]  ;;  %v796_v39 = vld [vmem:[#allocation12 + $0x5e8] sm:$0xff] }
 0x1fd   :  { %1260 = vmatpush.msra.mxu0 %v781_v40  ;;  %1300 = vmatpush.msra.mxu2 %v782_v41  ;;  %v829_v40 = vld [vmem:[#allocation12 + $0x6f0] sm:$0xff]  ;;  %v830_v41 = vld [vmem:[#allocation12 + $0x6f8] sm:$0xff] }
 0x1fe   :  { %1213 = vmatpush.msrb.mxu1 %v815_v42  ;;  %1253 = vmatpush.msrb.mxu3 %v816_v43  ;;  %v783_v42 = vld [vmem:[#allocation12 + $0x580] sm:$0xff]  ;;  %v784_v43 = vld [vmem:[#allocation12 + $0x588] sm:$0xff] }
 0x1ff   :  { %1261 = vmatpush.msra.mxu0 %v769_v44  ;;  %1301 = vmatpush.msra.mxu2 %v770_v45  ;;  %v817_v44 = vld [vmem:[#allocation12 + $0x690] sm:$0xff]  ;;  %v818_v45 = vld [vmem:[#allocation12 + $0x698] sm:$0xff] }
 0x200   :  { %1214 = vmatpush.msrb.mxu1 %v803_v47  ;;  %1254 = vmatpush.msrb.mxu3 %v804_v48  ;;  %v771_v47 = vld [vmem:[#allocation12 + $0x520] sm:$0xff]  ;;  %v772_v48 = vld [vmem:[#allocation12 + $0x528] sm:$0xff] }
 0x201   :  { %1215 = vmatmul.f32.vlgmr.msrb.gmra.mxu1 %v1830_v46  ;;  %1255 = vmatmul.f32.vlgmr.msrb.gmra.mxu3 %v1830_v46 }
 0x202   :  { %1262 = vmatpush.msra.mxu0 %v757_v49  ;;  %1279 = vmatpush.msra.mxu1 %v985_v50  ;;  %v805_v49 = vld [vmem:[#allocation12 + $0x630] sm:$0xff]  ;;  %v806_v50 = vld [vmem:[#allocation12 + $0x638] sm:$0xff] }
 0x203   :  { %1302 = vmatpush.msra.mxu2 %v758_v51  ;;  %1319 = vmatpush.msra.mxu3 %v986_v52  ;;  %v759_v51 = vld [vmem:[#allocation12 + $0x4c0] sm:$0xff] }
 0x204   :  { %1263 = vmatpush.msra.mxu0 %v745_v53  ;;  %1280 = vmatpush.msra.mxu1 %v973_v54  ;;  %v987_v52 = vld [vmem:[#allocation12 + $0xbe0] sm:$0xff]  ;;  %v760_v53 = vld [vmem:[#allocation12 + $0x4c8] sm:$0xff] }
 0x205   :  { %1303 = vmatpush.msra.mxu2 %v746_v55  ;;  %1320 = vmatpush.msra.mxu3 %v974_v56  ;;  %v988_v54 = vld [vmem:[#allocation12 + $0xbe8] sm:$0xff]  ;;  %v747_v55 = vld [vmem:[#allocation12 + $0x460] sm:$0xff] }
 0x206   :  { %1264 = vmatpush.msra.mxu0 %v733_v57  ;;  %1281 = vmatpush.msra.mxu1 %v961_v58  ;;  %v975_v56 = vld [vmem:[#allocation12 + $0xb80] sm:$0xff]  ;;  %v748_v57 = vld [vmem:[#allocation12 + $0x468] sm:$0xff] }
 0x207   :  { %1304 = vmatpush.msra.mxu2 %v734_v59  ;;  %1321 = vmatpush.msra.mxu3 %v962_v60  ;;  %v976_v58 = vld [vmem:[#allocation12 + $0xb88] sm:$0xff]  ;;  %v735_v59 = vld [vmem:[#allocation12 + $0x400] sm:$0xff] }
 0x208   :  { %1265 = vmatpush.msra.mxu0 %v721_v61  ;;  %1282 = vmatpush.msra.mxu1 %v949_v62  ;;  %v963_v60 = vld [vmem:[#allocation12 + $0xb20] sm:$0xff]  ;;  %v736_v61 = vld [vmem:[#allocation12 + $0x408] sm:$0xff] }
 0x209   :  { %1305 = vmatpush.msra.mxu2 %v722_v63  ;;  %1322 = vmatpush.msra.mxu3 %v950_v0  ;;  %v964_v62 = vld [vmem:[#allocation12 + $0xb28] sm:$0xff]  ;;  %v723_v63 = vld [vmem:[#allocation12 + $0x3a0] sm:$0xff] }
 0x20a   :  { %1266 = vmatpush.msra.mxu0 %v709_v1  ;;  %1283 = vmatpush.msra.mxu1 %v937_v2  ;;  %v951_v0 = vld [vmem:[#allocation12 + $0xac0] sm:$0xff]  ;;  %v724_v1 = vld [vmem:[#allocation12 + $0x3a8] sm:$0xff] }
 0x20b   :  { %1306 = vmatpush.msra.mxu2 %v710_v3  ;;  %1323 = vmatpush.msra.mxu3 %v938_v4  ;;  %v952_v2 = vld [vmem:[#allocation12 + $0xac8] sm:$0xff]  ;;  %v711_v3 = vld [vmem:[#allocation12 + $0x340] sm:$0xff] }
 0x20c   :  { %1267 = vmatpush.msra.mxu0 %v697_v5  ;;  %1284 = vmatpush.msra.mxu1 %v925_v6  ;;  %v939_v4 = vld [vmem:[#allocation12 + $0xa60] sm:$0xff]  ;;  %v712_v5 = vld [vmem:[#allocation12 + $0x348] sm:$0xff] }
 0x20d   :  { %1307 = vmatpush.msra.mxu2 %v698_v7  ;;  %1324 = vmatpush.msra.mxu3 %v926_v8  ;;  %v940_v6 = vld [vmem:[#allocation12 + $0xa68] sm:$0xff]  ;;  %v699_v7 = vld [vmem:[#allocation12 + $0x2e0] sm:$0xff] }
 0x20e   :  { %1268 = vmatpush.msra.mxu0 %v685_v9  ;;  %1285 = vmatpush.msra.mxu1 %v913_v10  ;;  %v927_v8 = vld [vmem:[#allocation12 + $0xa00] sm:$0xff]  ;;  %v700_v9 = vld [vmem:[#allocation12 + $0x2e8] sm:$0xff] }
 0x20f   :  { %1308 = vmatpush.msra.mxu2 %v686_v11  ;;  %1325 = vmatpush.msra.mxu3 %v914_v12  ;;  %v928_v10 = vld [vmem:[#allocation12 + $0xa08] sm:$0xff]  ;;  %v687_v11 = vld [vmem:[#allocation12 + $0x280] sm:$0xff] }
 0x210   :  { %1269 = vmatpush.msra.mxu0 %v673_v13  ;;  %1286 = vmatpush.msra.mxu1 %v901_v14  ;;  %v915_v12 = vld [vmem:[#allocation12 + $0x9a0] sm:$0xff]  ;;  %v688_v13 = vld [vmem:[#allocation12 + $0x288] sm:$0xff] }
 0x211   :  { %1309 = vmatpush.msra.mxu2 %v674_v15  ;;  %1326 = vmatpush.msra.mxu3 %v902_v16  ;;  %v916_v14 = vld [vmem:[#allocation12 + $0x9a8] sm:$0xff]  ;;  %v675_v15 = vld [vmem:[#allocation12 + $0x220] sm:$0xff] }
 0x212   :  { %1270 = vmatpush.msra.mxu0 %v661_v17  ;;  %1287 = vmatpush.msra.mxu1 %v889_v18  ;;  %v903_v16 = vld [vmem:[#allocation12 + $0x940] sm:$0xff]  ;;  %v676_v17 = vld [vmem:[#allocation12 + $0x228] sm:$0xff] }
 0x213   :  { %1310 = vmatpush.msra.mxu2 %v662_v19  ;;  %1327 = vmatpush.msra.mxu3 %v890_v20  ;;  %v904_v18 = vld [vmem:[#allocation12 + $0x948] sm:$0xff]  ;;  %v663_v19 = vld [vmem:[#allocation12 + $0x1c0] sm:$0xff] }
 0x214   :  { %1271 = vmatpush.msra.mxu0 %v649_v21  ;;  %1288 = vmatpush.msra.mxu1 %v877_v22  ;;  %v891_v20 = vld [vmem:[#allocation12 + $0x8e0] sm:$0xff]  ;;  %v664_v21 = vld [vmem:[#allocation12 + $0x1c8] sm:$0xff] }
 0x215   :  { %1311 = vmatpush.msra.mxu2 %v650_v23  ;;  %1328 = vmatpush.msra.mxu3 %v878_v24  ;;  %v892_v22 = vld [vmem:[#allocation12 + $0x8e8] sm:$0xff]  ;;  %v651_v23 = vld [vmem:[#allocation12 + $0x160] sm:$0xff] }
 0x216   :  { %1272 = vmatpush.msra.mxu0 %v637_v25  ;;  %1289 = vmatpush.msra.mxu1 %v865_v26  ;;  %v879_v24 = vld [vmem:[#allocation12 + $0x880] sm:$0xff]  ;;  %v652_v25 = vld [vmem:[#allocation12 + $0x168] sm:$0xff] }
 0x217   :  { %1312 = vmatpush.msra.mxu2 %v638_v27  ;;  %1329 = vmatpush.msra.mxu3 %v866_v28  ;;  %v880_v26 = vld [vmem:[#allocation12 + $0x888] sm:$0xff]  ;;  %v639_v27 = vld [vmem:[#allocation12 + $0x100] sm:$0xff] }
 0x218   :  { %1273 = vmatpush.msra.mxu0 %v625_v29  ;;  %1290 = vmatpush.msra.mxu1 %v853_v30  ;;  %v867_v28 = vld [vmem:[#allocation12 + $0x820] sm:$0xff]  ;;  %v640_v29 = vld [vmem:[#allocation12 + $0x108] sm:$0xff] }
 0x219   :  { %1313 = vmatpush.msra.mxu2 %v626_v31  ;;  %1330 = vmatpush.msra.mxu3 %v854_v32  ;;  %v868_v30 = vld [vmem:[#allocation12 + $0x828] sm:$0xff]  ;;  %v627_v31 = vld [vmem:[#allocation12 + $0xa0] sm:$0xff] }
 0x21a   :  { %1274 = vmatpush.msra.mxu0 %v613_v33  ;;  %1291 = vmatpush.msra.mxu1 %v841_v34  ;;  %v855_v32 = vld [vmem:[#allocation12 + $0x7c0] sm:$0xff]  ;;  %v628_v33 = vld [vmem:[#allocation12 + $0xa8] sm:$0xff] }
 0x21b   :  { %1314 = vmatpush.msra.mxu2 %v614_v35  ;;  %1331 = vmatpush.msra.mxu3 %v842_v37  ;;  %v856_v34 = vld [vmem:[#allocation12 + $0x7c8] sm:$0xff]  ;;  %v615_v35 = vld [vmem:[#allocation12 + $0x40] sm:$0xff] }
 0x21c   :  { %1275 = vmatmul.f32.vlgmr.msra.gmra.mxu0 %v1826_v36  ;;  %1315 = vmatmul.f32.vlgmr.msra.gmra.mxu2 %v1826_v36  ;;  %v843_v37 = vld [vmem:[#allocation12 + $0x760] sm:$0xff] }
 0x21d   :  { %1339 = vmatpush.msrb.mxu0 %v795_v38  ;;  %1379 = vmatpush.msrb.mxu2 %v796_v39  ;;  %v616_v38 = vld [vmem:[#allocation12 + $0x48] sm:$0xff] }
 0x21e   :  { %1292 = vmatpush.msra.mxu1 %v829_v40  ;;  %1332 = vmatpush.msra.mxu3 %v830_v41  ;;  %v844_v39 = vld [vmem:[#allocation12 + $0x768] sm:$0xff]  ;;  %v797_v40 = vld [vmem:[#allocation12 + $0x5f0] sm:$0xff]  ;;  %v798_v41 = vld [vmem:[#allocation12 + $0x5f8] sm:$0xff] }
 0x21f   :  { %1340 = vmatpush.msrb.mxu0 %v783_v42  ;;  %1380 = vmatpush.msrb.mxu2 %v784_v43  ;;  %v831_v42 = vld [vmem:[#allocation12 + $0x700] sm:$0xff]  ;;  %v832_v43 = vld [vmem:[#allocation12 + $0x708] sm:$0xff] }
 0x220   :  { %1293 = vmatpush.msra.mxu1 %v817_v44  ;;  %1333 = vmatpush.msra.mxu3 %v818_v45  ;;  %v785_v44 = vld [vmem:[#allocation12 + $0x590] sm:$0xff]  ;;  %v786_v45 = vld [vmem:[#allocation12 + $0x598] sm:$0xff] }
 0x221   :  { %1341 = vmatpush.msrb.mxu0 %v771_v47  ;;  %1381 = vmatpush.msrb.mxu2 %v772_v48  ;;  %v819_v47 = vld [vmem:[#allocation12 + $0x6a0] sm:$0xff]  ;;  %v820_v48 = vld [vmem:[#allocation12 + $0x6a8] sm:$0xff] }
 0x222   :  { %1294 = vmatpush.msra.mxu1 %v805_v49  ;;  %1334 = vmatpush.msra.mxu3 %v806_v50  ;;  %v773_v49 = vld [vmem:[#allocation12 + $0x530] sm:$0xff]  ;;  %v774_v50 = vld [vmem:[#allocation12 + $0x538] sm:$0xff] }
 0x223   :  { %1295 = vmatmul.f32.vlgmr.msra.gmra.mxu1 %v1830_v46  ;;  %1335 = vmatmul.f32.vlgmr.msra.gmra.mxu3 %v1830_v46 }
 0x224   :  { %1342 = vmatpush.msrb.mxu0 %v759_v51  ;;  %1359 = vmatpush.msrb.mxu1 %v987_v52  ;;  %v807_v51 = vld [vmem:[#allocation12 + $0x640] sm:$0xff]  ;;  %v808_v52 = vld [vmem:[#allocation12 + $0x648] sm:$0xff] }
 0x225   :  { %1382 = vmatpush.msrb.mxu2 %v760_v53  ;;  %1399 = vmatpush.msrb.mxu3 %v988_v54  ;;  %v761_v53 = vld [vmem:[#allocation12 + $0x4d0] sm:$0xff] }
 0x226   :  { %1343 = vmatpush.msrb.mxu0 %v747_v55  ;;  %1360 = vmatpush.msrb.mxu1 %v975_v56  ;;  %v989_v54 = vld [vmem:[#allocation12 + $0xbf0] sm:$0xff]  ;;  %v762_v55 = vld [vmem:[#allocation12 + $0x4d8] sm:$0xff] }
 0x227   :  { %1383 = vmatpush.msrb.mxu2 %v748_v57  ;;  %1400 = vmatpush.msrb.mxu3 %v976_v58  ;;  %v990_v56 = vld [vmem:[#allocation12 + $0xbf8] sm:$0xff]  ;;  %v749_v57 = vld [vmem:[#allocation12 + $0x470] sm:$0xff] }
 0x228   :  { %1344 = vmatpush.msrb.mxu0 %v735_v59  ;;  %1361 = vmatpush.msrb.mxu1 %v963_v60  ;;  %v977_v58 = vld [vmem:[#allocation12 + $0xb90] sm:$0xff]  ;;  %v750_v59 = vld [vmem:[#allocation12 + $0x478] sm:$0xff] }
 0x229   :  { %1384 = vmatpush.msrb.mxu2 %v736_v61  ;;  %1401 = vmatpush.msrb.mxu3 %v964_v62  ;;  %v978_v60 = vld [vmem:[#allocation12 + $0xb98] sm:$0xff]  ;;  %v737_v61 = vld [vmem:[#allocation12 + $0x410] sm:$0xff] }
 0x22a   :  { %1345 = vmatpush.msrb.mxu0 %v723_v63  ;;  %1362 = vmatpush.msrb.mxu1 %v951_v0  ;;  %v965_v62 = vld [vmem:[#allocation12 + $0xb30] sm:$0xff]  ;;  %v738_v63 = vld [vmem:[#allocation12 + $0x418] sm:$0xff] }
 0x22b   :  { %1385 = vmatpush.msrb.mxu2 %v724_v1  ;;  %1402 = vmatpush.msrb.mxu3 %v952_v2  ;;  %v966_v0 = vld [vmem:[#allocation12 + $0xb38] sm:$0xff]  ;;  %v725_v1 = vld [vmem:[#allocation12 + $0x3b0] sm:$0xff] }
 0x22c   :  { %1346 = vmatpush.msrb.mxu0 %v711_v3  ;;  %1363 = vmatpush.msrb.mxu1 %v939_v4  ;;  %v953_v2 = vld [vmem:[#allocation12 + $0xad0] sm:$0xff]  ;;  %v726_v3 = vld [vmem:[#allocation12 + $0x3b8] sm:$0xff] }
 0x22d   :  { %1386 = vmatpush.msrb.mxu2 %v712_v5  ;;  %1403 = vmatpush.msrb.mxu3 %v940_v6  ;;  %v954_v4 = vld [vmem:[#allocation12 + $0xad8] sm:$0xff]  ;;  %v713_v5 = vld [vmem:[#allocation12 + $0x350] sm:$0xff] }
 0x22e   :  { %1347 = vmatpush.msrb.mxu0 %v699_v7  ;;  %1364 = vmatpush.msrb.mxu1 %v927_v8  ;;  %v941_v6 = vld [vmem:[#allocation12 + $0xa70] sm:$0xff]  ;;  %v714_v7 = vld [vmem:[#allocation12 + $0x358] sm:$0xff] }
 0x22f   :  { %1387 = vmatpush.msrb.mxu2 %v700_v9  ;;  %1404 = vmatpush.msrb.mxu3 %v928_v10  ;;  %v942_v8 = vld [vmem:[#allocation12 + $0xa78] sm:$0xff]  ;;  %v701_v9 = vld [vmem:[#allocation12 + $0x2f0] sm:$0xff] }
 0x230   :  { %1348 = vmatpush.msrb.mxu0 %v687_v11  ;;  %1365 = vmatpush.msrb.mxu1 %v915_v12  ;;  %v929_v10 = vld [vmem:[#allocation12 + $0xa10] sm:$0xff]  ;;  %v702_v11 = vld [vmem:[#allocation12 + $0x2f8] sm:$0xff] }
 0x231   :  { %1388 = vmatpush.msrb.mxu2 %v688_v13  ;;  %1405 = vmatpush.msrb.mxu3 %v916_v14  ;;  %v930_v12 = vld [vmem:[#allocation12 + $0xa18] sm:$0xff]  ;;  %v689_v13 = vld [vmem:[#allocation12 + $0x290] sm:$0xff] }
 0x232   :  { %1349 = vmatpush.msrb.mxu0 %v675_v15  ;;  %1366 = vmatpush.msrb.mxu1 %v903_v16  ;;  %v917_v14 = vld [vmem:[#allocation12 + $0x9b0] sm:$0xff]  ;;  %v690_v15 = vld [vmem:[#allocation12 + $0x298] sm:$0xff] }
 0x233   :  { %1389 = vmatpush.msrb.mxu2 %v676_v17  ;;  %1406 = vmatpush.msrb.mxu3 %v904_v18  ;;  %v918_v16 = vld [vmem:[#allocation12 + $0x9b8] sm:$0xff]  ;;  %v677_v17 = vld [vmem:[#allocation12 + $0x230] sm:$0xff] }
 0x234   :  { %1350 = vmatpush.msrb.mxu0 %v663_v19  ;;  %1367 = vmatpush.msrb.mxu1 %v891_v20  ;;  %v905_v18 = vld [vmem:[#allocation12 + $0x950] sm:$0xff]  ;;  %v678_v19 = vld [vmem:[#allocation12 + $0x238] sm:$0xff] }
 0x235   :  { %1390 = vmatpush.msrb.mxu2 %v664_v21  ;;  %1407 = vmatpush.msrb.mxu3 %v892_v22  ;;  %v906_v20 = vld [vmem:[#allocation12 + $0x958] sm:$0xff]  ;;  %v1850_v21 = vld [vmem:[#allocation13] sm:$0xff]  ;;  %v665_v22 = vld [vmem:[#allocation12 + $0x1d0] sm:$0xff] }
 0x236   :  { %1351 = vmatpush.msrb.mxu0 %v651_v23  ;;  %1368 = vmatpush.msrb.mxu1 %v879_v24  ;;  %v893_v23 = vld [vmem:[#allocation12 + $0x8f0] sm:$0xff]  ;;  %v666_v24 = vld [vmem:[#allocation12 + $0x1d8] sm:$0xff] }
 0x237   :  { %1391 = vmatpush.msrb.mxu2 %v652_v25  ;;  %1408 = vmatpush.msrb.mxu3 %v880_v26  ;;  %v894_v25 = vld [vmem:[#allocation12 + $0x8f8] sm:$0xff]  ;;  %v653_v26 = vld [vmem:[#allocation12 + $0x170] sm:$0xff] }
 0x238   :  { %1352 = vmatpush.msrb.mxu0 %v639_v27  ;;  %1369 = vmatpush.msrb.mxu1 %v867_v28  ;;  %v881_v27 = vld [vmem:[#allocation12 + $0x890] sm:$0xff]  ;;  %v995_v28 = vperm.slane %v1850_v21, 0 }
 0x239   :  { %1392 = vmatpush.msrb.mxu2 %v640_v29  ;;  %1409 = vmatpush.msrb.mxu3 %v868_v30  ;;  %v654_v29 = vld [vmem:[#allocation12 + $0x178] sm:$0xff] }
 0x23a   :  { %1353 = vmatpush.msrb.mxu0 %v627_v31  ;;  %1370 = vmatpush.msrb.mxu1 %v855_v32  ;;  %v882_v30 = vld [vmem:[#allocation12 + $0x898] sm:$0xff]  ;;  %v641_v32 = vld [vmem:[#allocation12 + $0x110] sm:$0xff] }
 0x23b   :  { %1393 = vmatpush.msrb.mxu2 %v628_v33  ;;  %1410 = vmatpush.msrb.mxu3 %v856_v34  ;;  %v869_v33 = vld [vmem:[#allocation12 + $0x830] sm:$0xff]  ;;  %v642_v34 = vld [vmem:[#allocation12 + $0x118] sm:$0xff] }
 0x23c   :  { %1354 = vmatpush.msrb.mxu0 %v615_v35  ;;  %1371 = vmatpush.msrb.mxu1 %v843_v37  ;;  %v870_v35 = vld [vmem:[#allocation12 + $0x838] sm:$0xff]  ;;  %v629_v37 = vld [vmem:[#allocation12 + $0xb0] sm:$0xff] }
 0x23d   :  { %1394 = vmatpush.msrb.mxu2 %v616_v38  ;;  %1411 = vmatpush.msrb.mxu3 %v844_v39  ;;  %v857_v38 = vld [vmem:[#allocation12 + $0x7d0] sm:$0xff] }
 0x23e   :  { %1355 = vmatmul.f32.vlgmr.msrb.gmra.mxu0 %v1826_v36  ;;  %1395 = vmatmul.f32.vlgmr.msrb.gmra.mxu2 %v1826_v36 }
 0x23f   :  { %1419 = vmatpush.msra.mxu0 %v797_v40  ;;  %1459 = vmatpush.msra.mxu2 %v798_v41  ;;  %v630_v40 = vld [vmem:[#allocation12 + $0xb8] sm:$0xff] }
 0x240   :  { %1372 = vmatpush.msrb.mxu1 %v831_v42  ;;  %1412 = vmatpush.msrb.mxu3 %v832_v43  ;;  %v858_v41 = vld [vmem:[#allocation12 + $0x7d8] sm:$0xff]  ;;  %v617_v43 = vld [vmem:[#allocation12 + $0x50] sm:$0xff] }
 0x241   :  { %1420 = vmatpush.msra.mxu0 %v785_v44  ;;  %1460 = vmatpush.msra.mxu2 %v786_v45  ;;  %v845_v44 = vld [vmem:[#allocation12 + $0x770] sm:$0xff] }
 0x242   :  { %1373 = vmatpush.msrb.mxu1 %v819_v47  ;;  %1413 = vmatpush.msrb.mxu3 %v820_v48  ;;  %v996_v47 = vperm.slane %v1850_v21, 1  ;;  %v618_v48 = vld [vmem:[#allocation12 + $0x58] sm:$0xff] }
 0x243   :  { %1421 = vmatpush.msra.mxu0 %v773_v49  ;;  %1461 = vmatpush.msra.mxu2 %v774_v50  ;;  %v846_v49 = vld [vmem:[#allocation12 + $0x778] sm:$0xff] }
 0x244   :  { %1374 = vmatpush.msrb.mxu1 %v807_v51  ;;  %1414 = vmatpush.msrb.mxu3 %v808_v52  ;;  %v833_v51 = vld [vmem:[#allocation12 + $0x710] sm:$0xff]  ;;  %v834_v52 = vld [vmem:[#allocation12 + $0x718] sm:$0xff] }
 0x245   :  { %1375 = vmatmul.f32.vlgmr.msrb.gmra.mxu1 %v1830_v46  ;;  %1415 = vmatmul.f32.vlgmr.msrb.gmra.mxu3 %v1830_v46 }
 0x246   :  { %1422 = vmatpush.msra.mxu0 %v761_v53  ;;  %1439 = vmatpush.msra.mxu1 %v989_v54  ;;  %v997_v54 = vperm.slane %v1850_v21, 2 }
 0x247   :  { %1462 = vmatpush.msra.mxu2 %v762_v55  ;;  %1479 = vmatpush.msra.mxu3 %v990_v56  ;;  %v821_v55 = vld [vmem:[#allocation12 + $0x6b0] sm:$0xff]  ;;  %v822_v56 = vld [vmem:[#allocation12 + $0x6b8] sm:$0xff] }
 0x248   :  { %1423 = vmatpush.msra.mxu0 %v749_v57  ;;  %1440 = vmatpush.msra.mxu1 %v977_v58 }
 0x249   :  { %1463 = vmatpush.msra.mxu2 %v750_v59  ;;  %1480 = vmatpush.msra.mxu3 %v978_v60  ;;  %v809_v60 = vld [vmem:[#allocation12 + $0x650] sm:$0xff] }
 0x24a   :  { %1424 = vmatpush.msra.mxu0 %v737_v61  ;;  %1441 = vmatpush.msra.mxu1 %v965_v62  ;;  %v810_v61 = vld [vmem:[#allocation12 + $0x658] sm:$0xff] }
 0x24b   :  { %1464 = vmatpush.msra.mxu2 %v738_v63  ;;  %1481 = vmatpush.msra.mxu3 %v966_v0  ;;  %v998_v0 = vperm.slane %v1850_v21, 3 }
 0x24c   :  { %1425 = vmatpush.msra.mxu0 %v725_v1  ;;  %1442 = vmatpush.msra.mxu1 %v953_v2 }
 0x24d   :  { %1465 = vmatpush.msra.mxu2 %v726_v3  ;;  %1482 = vmatpush.msra.mxu3 %v954_v4 }
 0x24e   :  { %1426 = vmatpush.msra.mxu0 %v713_v5  ;;  %1443 = vmatpush.msra.mxu1 %v941_v6  ;;  %v999_v5 = vperm.slane %v1850_v21, 4 }
 0x24f   :  { %1466 = vmatpush.msra.mxu2 %v714_v7  ;;  %1483 = vmatpush.msra.mxu3 %v942_v8 }
 0x250   :  { %1427 = vmatpush.msra.mxu0 %v701_v9  ;;  %1444 = vmatpush.msra.mxu1 %v929_v10 }
 0x251   :  { %1467 = vmatpush.msra.mxu2 %v702_v11  ;;  %1484 = vmatpush.msra.mxu3 %v930_v12 }
 0x252   :  { %1428 = vmatpush.msra.mxu0 %v689_v13  ;;  %1445 = vmatpush.msra.mxu1 %v917_v14  ;;  %v1001_v14 = vperm.slane %v1850_v21, 6 }
 0x253   :  { %1468 = vmatpush.msra.mxu2 %v690_v15  ;;  %1485 = vmatpush.msra.mxu3 %v918_v16 }
 0x254   :  { %1429 = vmatpush.msra.mxu0 %v677_v17  ;;  %1446 = vmatpush.msra.mxu1 %v905_v18  ;;  %v1036_v31 = vpop.f32.mrf.mxu0 }
 0x255   :  { %1469 = vmatpush.msra.mxu2 %v678_v19  ;;  %1486 = vmatpush.msra.mxu3 %v906_v20  ;;  %v1037_v39 = vadd.f32 %v1036_v31, %v995_v28  ;;  %v1002_v19 = vperm.slane %v1850_v21, 7 }
 0x256   :  { %1430 = vmatpush.msra.mxu0 %v665_v22  ;;  %1447 = vmatpush.msra.mxu1 %v893_v23 }
 0x257   :  { %1470 = vmatpush.msra.mxu2 %v666_v24  ;;  %1487 = vmatpush.msra.mxu3 %v894_v25  ;;  %v992_v25 = vld [vmem:[#allocation13 + $0x8] sm:$0xf] }
 0x258   :  { %1431 = vmatpush.msra.mxu0 %v653_v26  ;;  %1448 = vmatpush.msra.mxu1 %v881_v27  ;;  %v1003_v26 = vperm.slane %v992_v25, 0  ;;  %v1004_v31 = vperm.slane %v992_v25, 1 }
 0x259   :  { %1471 = vmatpush.msra.mxu2 %v654_v29  ;;  %1488 = vmatpush.msra.mxu3 %v882_v30 }
 0x25a   :  { %1432 = vmatpush.msra.mxu0 %v641_v32  ;;  %1449 = vmatpush.msra.mxu1 %v869_v33  ;;  %v1056_v42 = vpop.f32.mrf.mxu1  ;;  %v1076_v50 = vpop.f32.mrf.mxu2 }
 0x25b   :  { %1472 = vmatpush.msra.mxu2 %v642_v34  ;;  %1489 = vmatpush.msra.mxu3 %v870_v35  ;;  %v1057_v45 = vadd.f32 %v1056_v42, %v1037_v39  ;;  %v1077_v53 = vadd.f32 %v1076_v50, %v996_v47  ;;  %v1005_v35 = vperm.slane %v992_v25, 2 }
 0x25c   :  { %1433 = vmatpush.msra.mxu0 %v629_v37  ;;  %1450 = vmatpush.msra.mxu1 %v857_v38 }
 0x25d   :  { %1473 = vmatpush.msra.mxu2 %v630_v40  ;;  %1490 = vmatpush.msra.mxu3 %v858_v41  ;;  %1499 = vst [vmem:[%s1909_s9] sm:$0xff] %v1057_v45  ;;  %v1116_v57 = vpop.f32.mrf.mxu0  ;;  %v1006_v41 = vperm.slane %v992_v25, 3 }
 0x25e   :  { %1434 = vmatpush.msra.mxu0 %v617_v43  ;;  %1451 = vmatpush.msra.mxu1 %v845_v44  ;;  %v1117_v62 = vadd.f32 %v1116_v57, %v997_v54 }
 0x25f   :  { %1474 = vmatpush.msra.mxu2 %v618_v48  ;;  %1491 = vmatpush.msra.mxu3 %v846_v49 }
 0x260   :  { %1435 = vmatmul.f32.vlgmr.msra.gmra.mxu0 %v1826_v36  ;;  %1475 = vmatmul.f32.vlgmr.msra.gmra.mxu2 %v1826_v36  ;;  %v1096_v58 = vpop.f32.mrf.mxu3 }
 0x261   :  { %1452 = vmatpush.msra.mxu1 %v833_v51  ;;  %1492 = vmatpush.msra.mxu3 %v834_v52  ;;  %v1097_v59 = vadd.f32 %v1096_v58, %v1077_v53 }
 0x263   :  { %1453 = vmatpush.msra.mxu1 %v821_v55  ;;  %1493 = vmatpush.msra.mxu3 %v822_v56  ;;  %1500 = vst [vmem:[%s1909_s9 + $0x8] sm:$0xff] %v1097_v59  ;;  %v1156_v1 = vpop.f32.mrf.mxu2 }
 0x264   :  { %v1136_v63 = vpop.f32.mrf.mxu1  ;;  %v1157_v2 = vadd.f32 %v1156_v1, %v998_v0 }
 0x265   :  { %1454 = vmatpush.msra.mxu1 %v809_v60  ;;  %1494 = vmatpush.msra.mxu3 %v810_v61  ;;  %v1137_v36 = vadd.f32 %v1136_v63, %v1117_v62 }
 0x266   :  { %1455 = vmatmul.f32.vlgmr.msra.gmra.mxu1 %v1830_v46  ;;  %1495 = vmatmul.f32.vlgmr.msra.gmra.mxu3 %v1830_v46  ;;  %v1000_v46 = vperm.slane %v1850_v21, 5 }
 0x267   :  { %1501 = vst [vmem:[%s1909_s9 + $0x10] sm:$0xff] %v1137_v36 }
 0x26a   :  { %v1176_v3 = vpop.f32.mrf.mxu3 }
 0x26b   :  { %v1177_v4 = vadd.f32 %v1176_v3, %v1157_v2 }
 0x26d   :  { %1502 = vst [vmem:[%s1909_s9 + $0x18] sm:$0xff] %v1177_v4 }
 0x277   :  { %v1196_v6 = vpop.f32.mrf.mxu0 }
 0x278   :  { %v1197_v7 = vadd.f32 %v1196_v6, %v999_v5 }
 0x27d   :  { %v1236_v10 = vpop.f32.mrf.mxu2 }
 0x27e   :  { %v1216_v8 = vpop.f32.mrf.mxu1  ;;  %v1237_v11 = vadd.f32 %v1236_v10, %v1000_v46 }
 0x27f   :  { %v1217_v9 = vadd.f32 %v1216_v8, %v1197_v7 }
 0x281   :  { %1503 = vst [vmem:[%s1909_s9 + $0x20] sm:$0xff] %v1217_v9 }
 0x284   :  { %v1256_v12 = vpop.f32.mrf.mxu3 }
 0x285   :  { %v1257_v13 = vadd.f32 %v1256_v12, %v1237_v11 }
 0x287   :  { %1504 = vst [vmem:[%s1909_s9 + $0x28] sm:$0xff] %v1257_v13 }
 0x299   :  { %v1276_v15 = vpop.f32.mrf.mxu0 }
 0x29a   :  { %v1277_v16 = vadd.f32 %v1276_v15, %v1001_v14 }
 0x29f   :  { %v1316_v20 = vpop.f32.mrf.mxu2 }
 0x2a0   :  { %v1296_v17 = vpop.f32.mrf.mxu1  ;;  %v1317_v22 = vadd.f32 %v1316_v20, %v1002_v19 }
 0x2a1   :  { %v1297_v18 = vadd.f32 %v1296_v17, %v1277_v16 }
 0x2a3   :  { %1505 = vst [vmem:[%s1909_s9 + $0x30] sm:$0xff] %v1297_v18 }
 0x2a6   :  { %v1336_v23 = vpop.f32.mrf.mxu3 }
 0x2a7   :  { %v1337_v24 = vadd.f32 %v1336_v23, %v1317_v22 }
 0x2a9   :  { %1506 = vst [vmem:[%s1909_s9 + $0x38] sm:$0xff] %v1337_v24 }
 0x2bb   :  { %v1356_v27 = vpop.f32.mrf.mxu0 }
 0x2bc   :  { %v1357_v28 = vadd.f32 %v1356_v27, %v1003_v26 }
 0x2c1   :  { %v1396_v21 = vpop.f32.mrf.mxu2 }
 0x2c2   :  { %v1376_v29 = vpop.f32.mrf.mxu1  ;;  %v1397_v32 = vadd.f32 %v1396_v21, %v1004_v31 }
 0x2c3   :  { %v1377_v30 = vadd.f32 %v1376_v29, %v1357_v28 }
 0x2c5   :  { %1507 = vst [vmem:[%s1909_s9 + $0x40] sm:$0xff] %v1377_v30 }
 0x2c8   :  { %v1416_v33 = vpop.f32.mrf.mxu3 }
 0x2c9   :  { %v1417_v34 = vadd.f32 %v1416_v33, %v1397_v32 }
 0x2cb   :  { %1508 = vst [vmem:[%s1909_s9 + $0x48] sm:$0xff] %v1417_v34 }
 0x2dd   :  { %v1436_v37 = vpop.f32.mrf.mxu0 }
 0x2de   :  { %v1437_v38 = vadd.f32 %v1436_v37, %v1005_v35 }
 0x2e3   :  { %v1456_v39 = vpop.f32.mrf.mxu1  ;;  %v1476_v42 = vpop.f32.mrf.mxu2 }
 0x2e4   :  { %v1457_v40 = vadd.f32 %v1456_v39, %v1437_v38  ;;  %v1477_v43 = vadd.f32 %v1476_v42, %v1006_v41 }
 0x2e6   :  { %1509 = vst [vmem:[%s1909_s9 + $0x50] sm:$0xff] %v1457_v40 }
 0x2e9   :  { %v1496_v44 = vpop.f32.mrf.mxu3 }
 0x2ea   :  { %v1497_v45 = vadd.f32 %v1496_v44, %v1477_v43 }
 0x2ec   :  { %1510 = vst [vmem:[%s1909_s9 + $0x58] sm:$0xff] %v1497_v45 }
 0x2ed   :  { %1515 = vsyncpa [#allocation3], 1 }
 0x2ee   :  { %1516 = vsyncpa [#allocation5], 1 }
 0x2ef   :  { %1517 = vsyncpa [#allocation8], 1 }
 0x2f0   :  { %1518 = vsyncpa [#allocation11], 1 }
 0x2f1   :  { %1519 = vsyncpa [#allocation14], 1 }

</bundles_post_ra>
